<compile_context>
chip_gen: v7x
topology: tpu7x:2x2x1
jax: 0.10.0
libtpu: 0.0.40
codegen_flags: <defaults>
</compile_context>

<pallas_src>
import math

import jax
import jax.numpy as jnp
from jax.experimental import pallas as pl
from jax.experimental.pallas import tpu as pltpu

# ---- model hyper-params (from the PyTorch source) ----
d_k = d_v = 9
d_model = 27
n_heads = 3
d_ff = d_model * 4
LN_EPS = 1e-5


def _layernorm(x):
    # LayerNorm over the last axis, gamma=1 / beta=0 (fresh nn.LayerNorm).
    mu = jnp.mean(x, axis=-1, keepdims=True)
    var = jnp.mean((x - mu) ** 2, axis=-1, keepdims=True)
    return (x - mu) * jax.lax.rsqrt(var + LN_EPS)


def decoder_layer_kernel(x_ref, wqkv_ref, wo_ref, w1_ref, w2_ref,
                         out_ref, attn_ref):
    """Processes a (Bblk, L, d_model) block of the batch per grid step.

    x_ref    : (Bblk, L, d_model)
    wqkv_ref : (3*n_heads, d_model, d_k)   groups: [Q heads | K heads | V heads]
    wo_ref   : (n_heads, d_v, d_model)
    w1_ref   : (d_model, d_ff)
    w2_ref   : (d_ff, d_model)
    out_ref  : (Bblk, L, d_model)
    attn_ref : (Bblk, n_heads, L, L)
    """
    bblk, L, _ = x_ref.shape
    scale = 1.0 / math.sqrt(d_k)

    # Hoist weight loads out of the (static, unrolled) loops.
    w1 = w1_ref[...]
    w2 = w2_ref[...]
    wo = [wo_ref[h] for h in range(n_heads)]
    wqkv = [wqkv_ref[g] for g in range(3 * n_heads)]

    for b in range(bblk):                       # static (1 or B) -> unrolled
        xb = x_ref[b]                           # (L, d_model)

        # Head-major fused QKV projection: one weight tensor, per-group MXU
        # dots.  Heads live on their own (leading) axis -> no lane slicing,
        # no cross-lane rotates.
        proj = [jnp.dot(xb, wqkv[g], preferred_element_type=jnp.float32)
                for g in range(3 * n_heads)]    # each (L, d_k)

        attn_out = jnp.zeros((L, d_model), jnp.float32)
        for h in range(n_heads):
            qh = proj[h]                        # (L, d_k)
            kh = proj[n_heads + h]              # (L, d_k)
            vh = proj[2 * n_heads + h]          # (L, d_v)

            # scores = qh @ kh.T with the transpose folded into dot_general
            # (no explicit XLU transpose of kh).
            scores = jax.lax.dot_general(
                qh, kh, (((1,), (1,)), ((), ())),
                preferred_element_type=jnp.float32) * scale       # (L, L)

            m = jnp.max(scores, axis=-1, keepdims=True)
            e = jnp.exp(scores - m)
            denom = jnp.sum(e, axis=-1, keepdims=True)
            # EUP reciprocal instead of a VPU divide (exact; approx=True could
            # risk the 1e-5 tolerance).
            attn = e * pl.reciprocal(denom)

            # Write attention weights per (batch, head) directly (no stack).
            attn_ref[b, h] = attn

            ctx = jnp.dot(attn, vh, preferred_element_type=jnp.float32)  # (L, d_v)
            # sum_h ctx_h @ W_O[h] == concat_h(ctx_h) @ W_O, so no lane-axis
            # concatenation of the per-head contexts is needed.
            attn_out = attn_out + jnp.dot(ctx, wo[h],
                                          preferred_element_type=jnp.float32)

        y = _layernorm(attn_out + xb)

        # Position-wise FFN + residual + LayerNorm.
        h1 = jnp.maximum(jnp.dot(y, w1, preferred_element_type=jnp.float32), 0.0)
        ff = jnp.dot(h1, w2, preferred_element_type=jnp.float32)
        out_ref[b] = _layernorm(ff + y)


def _multi_tensorcore_chip():
    """True on chips with >1 TensorCore (v7x) where a batch-parallel grid pays off."""
    try:
        kind = jax.devices()[0].device_kind.lower()
    except Exception:
        return False
    return any(tag in kind for tag in ("v7", "7x", "tpu7"))


def decoder_layer(x, wq, wk, wv, wo, w1, w2, *, batch_in_grid=None):
    """x: (B, L, d_model); wq/wk/wv: (d_model, n_heads*d_k);
    wo: (n_heads*d_v, d_model); w1: (d_model, d_ff); w2: (d_ff, d_model).
    Returns (out, attn)."""
    B, L, D = x.shape
    assert D == d_model

    # Wrapper-side repack: fused, head-major projection weights.
    wq_h = wq.reshape(d_model, n_heads, d_k).transpose(1, 0, 2)   # (H, D, d_k)
    wk_h = wk.reshape(d_model, n_heads, d_k).transpose(1, 0, 2)
    wv_h = wv.reshape(d_model, n_heads, d_v).transpose(1, 0, 2)
    wqkv = jnp.concatenate([wq_h, wk_h, wv_h], axis=0)            # (3H, D, d_k)
    wo_h = wo.reshape(n_heads, d_v, d_model)                      # (H, d_v, D)

    if batch_in_grid is None:
        # v5e / v6e: single TensorCore -> collapse the grid to one step over
        # the whole batch (kills per-grid-step pipeline overhead).
        # v7x: 2 TensorCores -> one batch element per grid step so the
        # "parallel" batch axis can be sharded across cores.
        batch_in_grid = _multi_tensorcore_chip() and B > 1

    bblk = 1 if batch_in_grid else B
    grid = (B // bblk,)

    def full(a):
        ndim = a.ndim
        return pl.BlockSpec(a.shape, lambda b, _n=ndim: (0,) * _n)

    flops = int(B * L * (2 * d_model * (3 * n_heads * d_k)   # QKV projection
                         + 2 * n_heads * d_k * L             # scores
                         + 2 * n_heads * d_v * L             # context
                         + 2 * n_heads * d_v * d_model       # output projection
                         + 4 * d_model * d_ff))              # FFN (two matmuls)
    transcendentals = int(B * n_heads * L * L + 6 * B * L)
    bytes_accessed = int(4 * (x.size + wqkv.size + wo_h.size + w1.size + w2.size
                              + B * L * d_model + B * n_heads * L * L))

    return pl.pallas_call(
        decoder_layer_kernel,
        out_shape=(
            jax.ShapeDtypeStruct((B, L, D), jnp.float32),
            jax.ShapeDtypeStruct((B, n_heads, L, L), jnp.float32),
        ),
        grid=grid,
        in_specs=[
            pl.BlockSpec((bblk, L, D), lambda b: (b, 0, 0)),
            full(wqkv), full(wo_h), full(w1), full(w2),
        ],
        out_specs=(
            pl.BlockSpec((bblk, L, D), lambda b: (b, 0, 0)),
            pl.BlockSpec((bblk, n_heads, L, L), lambda b: (b, 0, 0, 0)),
        ),
        compiler_params=pltpu.CompilerParams(dimension_semantics=("parallel",)),
        cost_estimate=pl.CostEstimate(flops=flops,
                                      transcendentals=transcendentals,
                                      bytes_accessed=bytes_accessed),
    )(x, wqkv, wo_h, w1, w2)


# ---------------- pure-JAX reference (for correctness check) ----------------
def reference(x, wq, wk, wv, wo, w1, w2):
    B, L, D = x.shape
    Q = (x @ wq).reshape(B, L, n_heads, d_k).transpose(0, 2, 1, 3)
    K = (x @ wk).reshape(B, L, n_heads, d_k).transpose(0, 2, 1, 3)
    V = (x @ wv).reshape(B, L, n_heads, d_v).transpose(0, 2, 1, 3)
    scores = jnp.einsum("bhqd,bhkd->bhqk", Q, K) / math.sqrt(d_k)
    attn = jax.nn.softmax(scores, axis=-1)
    ctx = jnp.einsum("bhqk,bhkd->bhqd", attn, V)
    ctx = ctx.transpose(0, 2, 1, 3).reshape(B, L, n_heads * d_v)
    y = _layernorm(ctx @ wo + x)
    ff = jnp.maximum(y @ w1, 0.0) @ w2
    out = _layernorm(ff + y)
    return out, attn


if __name__ == "__main__":
    B, L = 2, 8  # small shapes: batch=2, tgt_len=8, d_model=27

    key = jax.random.PRNGKey(0)
    kx, kq, kk, kv, ko, k1, k2 = jax.random.split(key, 7)

    x = jax.random.normal(kx, (B, L, d_model), dtype=jnp.float32)
    # Deterministic synthetic weights, stored as (in, out).
    wq = jax.random.normal(kq, (d_model, n_heads * d_k), dtype=jnp.float32) * 0.1
    wk = jax.random.normal(kk, (d_model, n_heads * d_k), dtype=jnp.float32) * 0.1
    wv = jax.random.normal(kv, (d_model, n_heads * d_v), dtype=jnp.float32) * 0.1
    wo = jax.random.normal(ko, (n_heads * d_v, d_model), dtype=jnp.float32) * 0.1
    w1 = jax.random.normal(k1, (d_model, d_ff), dtype=jnp.float32) * 0.1
    w2 = jax.random.normal(k2, (d_ff, d_model), dtype=jnp.float32) * 0.1

    out, attn = decoder_layer(x, wq, wk, wv, wo, w1, w2)
    jax.block_until_ready((out, attn))

    ref_out, ref_attn = reference(x, wq, wk, wv, wo, w1, w2)
    assert jnp.allclose(out, ref_out, atol=1e-5, rtol=1e-5), "output mismatch"
    assert jnp.allclose(attn, ref_attn, atol=1e-5, rtol=1e-5), "attn mismatch"

    print("KERNEL_OK")
</pallas_src>

<mosaic_0001>
module attributes {stable_mosaic.version = 11 : i64} {
  func.func @decoder_layer_kernel(%arg0: i32, %arg1: memref<2x8x27xf32, #tpu.memory_space<vmem>>, %arg2: memref<9x27x9xf32, #tpu.memory_space<vmem>>, %arg3: memref<3x9x27xf32, #tpu.memory_space<vmem>>, %arg4: memref<27x108xf32, #tpu.memory_space<vmem>>, %arg5: memref<108x27xf32, #tpu.memory_space<vmem>>, %arg6: memref<2x8x27xf32, #tpu.memory_space<vmem>>, %arg7: memref<2x3x8x8xf32, #tpu.memory_space<vmem>>) attributes {dimension_semantics = [#tpu.dimension_semantics<parallel>], iteration_bounds = array<i64: 1>, scalar_prefetch = 0 : i64, scratch_operands = 0 : i64, tpu.core_type = #tpu.core_type<tc>, window_params = [{transform_indices = @transform_0, window_bounds = array<i64: 2, 8, 27>}, {pipeline_mode = #tpu.pipeline_mode<synchronous>, transform_indices = @transform_1, window_bounds = array<i64: 9, 27, 9>}, {pipeline_mode = #tpu.pipeline_mode<synchronous>, transform_indices = @transform_2, window_bounds = array<i64: 3, 9, 27>}, {pipeline_mode = #tpu.pipeline_mode<synchronous>, transform_indices = @transform_3, window_bounds = array<i64: 27, 108>}, {pipeline_mode = #tpu.pipeline_mode<synchronous>, transform_indices = @transform_4, window_bounds = array<i64: 108, 27>}, {transform_indices = @transform_5, window_bounds = array<i64: 2, 8, 27>}, {transform_indices = @transform_6, window_bounds = array<i64: 2, 3, 8, 8>}]} {
    %c0 = arith.constant 0 : index
    %c0_0 = arith.constant 0 : index
    %0 = vector.load %arg4[%c0, %c0_0] : memref<27x108xf32, #tpu.memory_space<vmem>>, vector<27x108xf32>
    %c0_1 = arith.constant 0 : index
    %c0_2 = arith.constant 0 : index
    %1 = vector.load %arg5[%c0_1, %c0_2] : memref<108x27xf32, #tpu.memory_space<vmem>>, vector<108x27xf32>
    %c0_3 = arith.constant 0 : index
    %c0_4 = arith.constant 0 : index
    %c0_5 = arith.constant 0 : index
    %2 = vector.load %arg3[%c0_3, %c0_4, %c0_5] : memref<3x9x27xf32, #tpu.memory_space<vmem>>, vector<1x9x27xf32>
    %3 = vector.shape_cast %2 : vector<1x9x27xf32> to vector<9x27xf32>
    %c1 = arith.constant 1 : index
    %c0_6 = arith.constant 0 : index
    %c0_7 = arith.constant 0 : index
    %4 = vector.load %arg3[%c1, %c0_6, %c0_7] : memref<3x9x27xf32, #tpu.memory_space<vmem>>, vector<1x9x27xf32>
    %5 = vector.shape_cast %4 : vector<1x9x27xf32> to vector<9x27xf32>
    %c2 = arith.constant 2 : index
    %c0_8 = arith.constant 0 : index
    %c0_9 = arith.constant 0 : index
    %6 = vector.load %arg3[%c2, %c0_8, %c0_9] : memref<3x9x27xf32, #tpu.memory_space<vmem>>, vector<1x9x27xf32>
    %7 = vector.shape_cast %6 : vector<1x9x27xf32> to vector<9x27xf32>
    %c0_10 = arith.constant 0 : index
    %c0_11 = arith.constant 0 : index
    %c0_12 = arith.constant 0 : index
    %8 = vector.load %arg2[%c0_10, %c0_11, %c0_12] : memref<9x27x9xf32, #tpu.memory_space<vmem>>, vector<1x27x9xf32>
    %9 = vector.shape_cast %8 : vector<1x27x9xf32> to vector<27x9xf32>
    %c1_13 = arith.constant 1 : index
    %c0_14 = arith.constant 0 : index
    %c0_15 = arith.constant 0 : index
    %10 = vector.load %arg2[%c1_13, %c0_14, %c0_15] : memref<9x27x9xf32, #tpu.memory_space<vmem>>, vector<1x27x9xf32>
    %11 = vector.shape_cast %10 : vector<1x27x9xf32> to vector<27x9xf32>
    %c2_16 = arith.constant 2 : index
    %c0_17 = arith.constant 0 : index
    %c0_18 = arith.constant 0 : index
    %12 = vector.load %arg2[%c2_16, %c0_17, %c0_18] : memref<9x27x9xf32, #tpu.memory_space<vmem>>, vector<1x27x9xf32>
    %13 = vector.shape_cast %12 : vector<1x27x9xf32> to vector<27x9xf32>
    %c3 = arith.constant 3 : index
    %c0_19 = arith.constant 0 : index
    %c0_20 = arith.constant 0 : index
    %14 = vector.load %arg2[%c3, %c0_19, %c0_20] : memref<9x27x9xf32, #tpu.memory_space<vmem>>, vector<1x27x9xf32>
    %15 = vector.shape_cast %14 : vector<1x27x9xf32> to vector<27x9xf32>
    %c4 = arith.constant 4 : index
    %c0_21 = arith.constant 0 : index
    %c0_22 = arith.constant 0 : index
    %16 = vector.load %arg2[%c4, %c0_21, %c0_22] : memref<9x27x9xf32, #tpu.memory_space<vmem>>, vector<1x27x9xf32>
    %17 = vector.shape_cast %16 : vector<1x27x9xf32> to vector<27x9xf32>
    %c5 = arith.constant 5 : index
    %c0_23 = arith.constant 0 : index
    %c0_24 = arith.constant 0 : index
    %18 = vector.load %arg2[%c5, %c0_23, %c0_24] : memref<9x27x9xf32, #tpu.memory_space<vmem>>, vector<1x27x9xf32>
    %19 = vector.shape_cast %18 : vector<1x27x9xf32> to vector<27x9xf32>
    %c6 = arith.constant 6 : index
    %c0_25 = arith.constant 0 : index
    %c0_26 = arith.constant 0 : index
    %20 = vector.load %arg2[%c6, %c0_25, %c0_26] : memref<9x27x9xf32, #tpu.memory_space<vmem>>, vector<1x27x9xf32>
    %21 = vector.shape_cast %20 : vector<1x27x9xf32> to vector<27x9xf32>
    %c7 = arith.constant 7 : index
    %c0_27 = arith.constant 0 : index
    %c0_28 = arith.constant 0 : index
    %22 = vector.load %arg2[%c7, %c0_27, %c0_28] : memref<9x27x9xf32, #tpu.memory_space<vmem>>, vector<1x27x9xf32>
    %23 = vector.shape_cast %22 : vector<1x27x9xf32> to vector<27x9xf32>
    %c8 = arith.constant 8 : index
    %c0_29 = arith.constant 0 : index
    %c0_30 = arith.constant 0 : index
    %24 = vector.load %arg2[%c8, %c0_29, %c0_30] : memref<9x27x9xf32, #tpu.memory_space<vmem>>, vector<1x27x9xf32>
    %25 = vector.shape_cast %24 : vector<1x27x9xf32> to vector<27x9xf32>
    %c0_31 = arith.constant 0 : index
    %c0_32 = arith.constant 0 : index
    %c0_33 = arith.constant 0 : index
    %26 = vector.load %arg1[%c0_31, %c0_32, %c0_33] : memref<2x8x27xf32, #tpu.memory_space<vmem>>, vector<1x8x27xf32>
    %27 = vector.shape_cast %26 : vector<1x8x27xf32> to vector<8x27xf32>
    %cst = arith.constant dense<0.000000e+00> : vector<8x9xf32>
    %28 = tpu.matmul %27, %9, %cst {dimension_numbers = #tpu.dot_dimension_numbers<[1], [0], [0], [1], [0, 0, 1, 1], [], []>} : vector<8x27xf32>, vector<27x9xf32>, vector<8x9xf32> -> vector<8x9xf32>
    %cst_34 = arith.constant dense<0.000000e+00> : vector<8x9xf32>
    %29 = tpu.matmul %27, %11, %cst_34 {dimension_numbers = #tpu.dot_dimension_numbers<[1], [0], [0], [1], [0, 0, 1, 1], [], []>} : vector<8x27xf32>, vector<27x9xf32>, vector<8x9xf32> -> vector<8x9xf32>
    %cst_35 = arith.constant dense<0.000000e+00> : vector<8x9xf32>
    %30 = tpu.matmul %27, %13, %cst_35 {dimension_numbers = #tpu.dot_dimension_numbers<[1], [0], [0], [1], [0, 0, 1, 1], [], []>} : vector<8x27xf32>, vector<27x9xf32>, vector<8x9xf32> -> vector<8x9xf32>
    %cst_36 = arith.constant dense<0.000000e+00> : vector<8x9xf32>
    %31 = tpu.matmul %27, %15, %cst_36 {dimension_numbers = #tpu.dot_dimension_numbers<[1], [0], [0], [1], [0, 0, 1, 1], [], []>} : vector<8x27xf32>, vector<27x9xf32>, vector<8x9xf32> -> vector<8x9xf32>
    %cst_37 = arith.constant dense<0.000000e+00> : vector<8x9xf32>
    %32 = tpu.matmul %27, %17, %cst_37 {dimension_numbers = #tpu.dot_dimension_numbers<[1], [0], [0], [1], [0, 0, 1, 1], [], []>} : vector<8x27xf32>, vector<27x9xf32>, vector<8x9xf32> -> vector<8x9xf32>
    %cst_38 = arith.constant dense<0.000000e+00> : vector<8x9xf32>
    %33 = tpu.matmul %27, %19, %cst_38 {dimension_numbers = #tpu.dot_dimension_numbers<[1], [0], [0], [1], [0, 0, 1, 1], [], []>} : vector<8x27xf32>, vector<27x9xf32>, vector<8x9xf32> -> vector<8x9xf32>
    %cst_39 = arith.constant dense<0.000000e+00> : vector<8x9xf32>
    %34 = tpu.matmul %27, %21, %cst_39 {dimension_numbers = #tpu.dot_dimension_numbers<[1], [0], [0], [1], [0, 0, 1, 1], [], []>} : vector<8x27xf32>, vector<27x9xf32>, vector<8x9xf32> -> vector<8x9xf32>
    %cst_40 = arith.constant dense<0.000000e+00> : vector<8x9xf32>
    %35 = tpu.matmul %27, %23, %cst_40 {dimension_numbers = #tpu.dot_dimension_numbers<[1], [0], [0], [1], [0, 0, 1, 1], [], []>} : vector<8x27xf32>, vector<27x9xf32>, vector<8x9xf32> -> vector<8x9xf32>
    %cst_41 = arith.constant dense<0.000000e+00> : vector<8x9xf32>
    %36 = tpu.matmul %27, %25, %cst_41 {dimension_numbers = #tpu.dot_dimension_numbers<[1], [0], [0], [1], [0, 0, 1, 1], [], []>} : vector<8x27xf32>, vector<27x9xf32>, vector<8x9xf32> -> vector<8x9xf32>
    %cst_42 = arith.constant 0.000000e+00 : f32
    %37 = vector.broadcast %cst_42 : f32 to vector<8x27xf32>
    %cst_43 = arith.constant dense<0.000000e+00> : vector<8x8xf32>
    %38 = tpu.matmul %28, %31, %cst_43 {dimension_numbers = #tpu.dot_dimension_numbers<[1], [1], [0], [0], [0, 0, 1, 0], [], []>} : vector<8x9xf32>, vector<8x9xf32>, vector<8x8xf32> -> vector<8x8xf32>
    %cst_44 = arith.constant 0.333333343 : f32
    %39 = vector.broadcast %cst_44 : f32 to vector<8x8xf32>
    %40 = arith.mulf %38, %39 : vector<8x8xf32>
    %cst_45 = arith.constant dense<0xFF800000> : vector<8xf32>
    %41 = vector.multi_reduction <maximumf>, %40, %cst_45 [1] : vector<8x8xf32> to vector<8xf32>
    %42 = vector.shape_cast %41 : vector<8xf32> to vector<8x1xf32>
    %43 = vector.broadcast %42 : vector<8x1xf32> to vector<8x8xf32>
    %44 = arith.subf %40, %43 : vector<8x8xf32>
    %45 = math.exp %44 : vector<8x8xf32>
    %cst_46 = arith.constant dense<0.000000e+00> : vector<8xf32>
    %46 = vector.multi_reduction <add>, %45, %cst_46 [1] : vector<8x8xf32> to vector<8xf32>
    %47 = vector.shape_cast %46 : vector<8xf32> to vector<8x1xf32>
    %48 = tpu.reciprocal %47 : vector<8x1xf32> -> vector<8x1xf32>
    %49 = vector.broadcast %48 : vector<8x1xf32> to vector<8x8xf32>
    %50 = arith.mulf %45, %49 : vector<8x8xf32>
    %c0_47 = arith.constant 0 : index
    %c0_48 = arith.constant 0 : index
    %c0_49 = arith.constant 0 : index
    %c0_50 = arith.constant 0 : index
    %51 = vector.load %arg7[%c0_47, %c0_48, %c0_49, %c0_50] : memref<2x3x8x8xf32, #tpu.memory_space<vmem>>, vector<1x1x8x8xf32>
    %52 = vector.shape_cast %51 : vector<1x1x8x8xf32> to vector<8x8xf32>
    %53 = vector.shape_cast %50 : vector<8x8xf32> to vector<1x1x8x8xf32>
    tpu.vector_store %arg7[%c0_47, %c0_48, %c0_49, %c0_50], %53 {strides = array<i32>} : memref<2x3x8x8xf32, #tpu.memory_space<vmem>>, vector<1x1x8x8xf32>,
    %cst_51 = arith.constant dense<0.000000e+00> : vector<8x9xf32>
    %54 = tpu.matmul %50, %34, %cst_51 {dimension_numbers = #tpu.dot_dimension_numbers<[1], [0], [0], [1], [0, 0, 1, 1], [], []>} : vector<8x8xf32>, vector<8x9xf32>, vector<8x9xf32> -> vector<8x9xf32>
    %cst_52 = arith.constant dense<0.000000e+00> : vector<8x27xf32>
    %55 = tpu.matmul %54, %3, %cst_52 {dimension_numbers = #tpu.dot_dimension_numbers<[1], [0], [0], [1], [0, 0, 1, 1], [], []>} : vector<8x9xf32>, vector<9x27xf32>, vector<8x27xf32> -> vector<8x27xf32>
    %56 = arith.addf %37, %55 : vector<8x27xf32>
    %cst_53 = arith.constant dense<0.000000e+00> : vector<8x8xf32>
    %57 = tpu.matmul %29, %32, %cst_53 {dimension_numbers = #tpu.dot_dimension_numbers<[1], [1], [0], [0], [0, 0, 1, 0], [], []>} : vector<8x9xf32>, vector<8x9xf32>, vector<8x8xf32> -> vector<8x8xf32>
    %cst_54 = arith.constant 0.333333343 : f32
    %58 = vector.broadcast %cst_54 : f32 to vector<8x8xf32>
    %59 = arith.mulf %57, %58 : vector<8x8xf32>
    %cst_55 = arith.constant dense<0xFF800000> : vector<8xf32>
    %60 = vector.multi_reduction <maximumf>, %59, %cst_55 [1] : vector<8x8xf32> to vector<8xf32>
    %61 = vector.shape_cast %60 : vector<8xf32> to vector<8x1xf32>
    %62 = vector.broadcast %61 : vector<8x1xf32> to vector<8x8xf32>
    %63 = arith.subf %59, %62 : vector<8x8xf32>
    %64 = math.exp %63 : vector<8x8xf32>
    %cst_56 = arith.constant dense<0.000000e+00> : vector<8xf32>
    %65 = vector.multi_reduction <add>, %64, %cst_56 [1] : vector<8x8xf32> to vector<8xf32>
    %66 = vector.shape_cast %65 : vector<8xf32> to vector<8x1xf32>
    %67 = tpu.reciprocal %66 : vector<8x1xf32> -> vector<8x1xf32>
    %68 = vector.broadcast %67 : vector<8x1xf32> to vector<8x8xf32>
    %69 = arith.mulf %64, %68 : vector<8x8xf32>
    %c0_57 = arith.constant 0 : index
    %c1_58 = arith.constant 1 : index
    %c0_59 = arith.constant 0 : index
    %c0_60 = arith.constant 0 : index
    %70 = vector.load %arg7[%c0_57, %c1_58, %c0_59, %c0_60] : memref<2x3x8x8xf32, #tpu.memory_space<vmem>>, vector<1x1x8x8xf32>
    %71 = vector.shape_cast %70 : vector<1x1x8x8xf32> to vector<8x8xf32>
    %72 = vector.shape_cast %69 : vector<8x8xf32> to vector<1x1x8x8xf32>
    tpu.vector_store %arg7[%c0_57, %c1_58, %c0_59, %c0_60], %72 {strides = array<i32>} : memref<2x3x8x8xf32, #tpu.memory_space<vmem>>, vector<1x1x8x8xf32>,
    %cst_61 = arith.constant dense<0.000000e+00> : vector<8x9xf32>
    %73 = tpu.matmul %69, %35, %cst_61 {dimension_numbers = #tpu.dot_dimension_numbers<[1], [0], [0], [1], [0, 0, 1, 1], [], []>} : vector<8x8xf32>, vector<8x9xf32>, vector<8x9xf32> -> vector<8x9xf32>
    %cst_62 = arith.constant dense<0.000000e+00> : vector<8x27xf32>
    %74 = tpu.matmul %73, %5, %cst_62 {dimension_numbers = #tpu.dot_dimension_numbers<[1], [0], [0], [1], [0, 0, 1, 1], [], []>} : vector<8x9xf32>, vector<9x27xf32>, vector<8x27xf32> -> vector<8x27xf32>
    %75 = arith.addf %56, %74 : vector<8x27xf32>
    %cst_63 = arith.constant dense<0.000000e+00> : vector<8x8xf32>
    %76 = tpu.matmul %30, %33, %cst_63 {dimension_numbers = #tpu.dot_dimension_numbers<[1], [1], [0], [0], [0, 0, 1, 0], [], []>} : vector<8x9xf32>, vector<8x9xf32>, vector<8x8xf32> -> vector<8x8xf32>
    %cst_64 = arith.constant 0.333333343 : f32
    %77 = vector.broadcast %cst_64 : f32 to vector<8x8xf32>
    %78 = arith.mulf %76, %77 : vector<8x8xf32>
    %cst_65 = arith.constant dense<0xFF800000> : vector<8xf32>
    %79 = vector.multi_reduction <maximumf>, %78, %cst_65 [1] : vector<8x8xf32> to vector<8xf32>
    %80 = vector.shape_cast %79 : vector<8xf32> to vector<8x1xf32>
    %81 = vector.broadcast %80 : vector<8x1xf32> to vector<8x8xf32>
    %82 = arith.subf %78, %81 : vector<8x8xf32>
    %83 = math.exp %82 : vector<8x8xf32>
    %cst_66 = arith.constant dense<0.000000e+00> : vector<8xf32>
    %84 = vector.multi_reduction <add>, %83, %cst_66 [1] : vector<8x8xf32> to vector<8xf32>
    %85 = vector.shape_cast %84 : vector<8xf32> to vector<8x1xf32>
    %86 = tpu.reciprocal %85 : vector<8x1xf32> -> vector<8x1xf32>
    %87 = vector.broadcast %86 : vector<8x1xf32> to vector<8x8xf32>
    %88 = arith.mulf %83, %87 : vector<8x8xf32>
    %c0_67 = arith.constant 0 : index
    %c2_68 = arith.constant 2 : index
    %c0_69 = arith.constant 0 : index
    %c0_70 = arith.constant 0 : index
    %89 = vector.load %arg7[%c0_67, %c2_68, %c0_69, %c0_70] : memref<2x3x8x8xf32, #tpu.memory_space<vmem>>, vector<1x1x8x8xf32>
    %90 = vector.shape_cast %89 : vector<1x1x8x8xf32> to vector<8x8xf32>
    %91 = vector.shape_cast %88 : vector<8x8xf32> to vector<1x1x8x8xf32>
    tpu.vector_store %arg7[%c0_67, %c2_68, %c0_69, %c0_70], %91 {strides = array<i32>} : memref<2x3x8x8xf32, #tpu.memory_space<vmem>>, vector<1x1x8x8xf32>,
    %cst_71 = arith.constant dense<0.000000e+00> : vector<8x9xf32>
    %92 = tpu.matmul %88, %36, %cst_71 {dimension_numbers = #tpu.dot_dimension_numbers<[1], [0], [0], [1], [0, 0, 1, 1], [], []>} : vector<8x8xf32>, vector<8x9xf32>, vector<8x9xf32> -> vector<8x9xf32>
    %cst_72 = arith.constant dense<0.000000e+00> : vector<8x27xf32>
    %93 = tpu.matmul %92, %7, %cst_72 {dimension_numbers = #tpu.dot_dimension_numbers<[1], [0], [0], [1], [0, 0, 1, 1], [], []>} : vector<8x9xf32>, vector<9x27xf32>, vector<8x27xf32> -> vector<8x27xf32>
    %94 = arith.addf %75, %93 : vector<8x27xf32>
    %95 = arith.addf %94, %27 : vector<8x27xf32>
    %cst_73 = arith.constant dense<0.000000e+00> : vector<8xf32>
    %96 = vector.multi_reduction <add>, %95, %cst_73 [1] : vector<8x27xf32> to vector<8xf32>
    %97 = vector.shape_cast %96 : vector<8xf32> to vector<8x1xf32>
    %cst_74 = arith.constant 2.700000e+01 : f32
    %98 = vector.broadcast %cst_74 : f32 to vector<8x1xf32>
    %99 = arith.divf %97, %98 : vector<8x1xf32>
    %100 = vector.broadcast %99 : vector<8x1xf32> to vector<8x27xf32>
    %101 = arith.subf %95, %100 : vector<8x27xf32>
    %102 = arith.mulf %101, %101 : vector<8x27xf32>
    %cst_75 = arith.constant dense<0.000000e+00> : vector<8xf32>
    %103 = vector.multi_reduction <add>, %102, %cst_75 [1] : vector<8x27xf32> to vector<8xf32>
    %104 = vector.shape_cast %103 : vector<8xf32> to vector<8x1xf32>
    %cst_76 = arith.constant 2.700000e+01 : f32
    %105 = vector.broadcast %cst_76 : f32 to vector<8x1xf32>
    %106 = arith.divf %104, %105 : vector<8x1xf32>
    %107 = vector.broadcast %99 : vector<8x1xf32> to vector<8x27xf32>
    %108 = arith.subf %95, %107 : vector<8x27xf32>
    %cst_77 = arith.constant 9.99999974E-6 : f32
    %109 = vector.broadcast %cst_77 : f32 to vector<8x1xf32>
    %110 = arith.addf %106, %109 : vector<8x1xf32>
    %111 = math.rsqrt %110 : vector<8x1xf32>
    %112 = vector.broadcast %111 : vector<8x1xf32> to vector<8x27xf32>
    %113 = arith.mulf %108, %112 : vector<8x27xf32>
    %cst_78 = arith.constant dense<0.000000e+00> : vector<8x108xf32>
    %114 = tpu.matmul %113, %0, %cst_78 {dimension_numbers = #tpu.dot_dimension_numbers<[1], [0], [0], [1], [0, 0, 1, 1], [], []>} : vector<8x27xf32>, vector<27x108xf32>, vector<8x108xf32> -> vector<8x108xf32>
    %cst_79 = arith.constant 0.000000e+00 : f32
    %115 = vector.broadcast %cst_79 : f32 to vector<8x108xf32>
    %116 = arith.maximumf %114, %115 : vector<8x108xf32>
    %cst_80 = arith.constant dense<0.000000e+00> : vector<8x27xf32>
    %117 = tpu.matmul %116, %1, %cst_80 {dimension_numbers = #tpu.dot_dimension_numbers<[1], [0], [0], [1], [0, 0, 1, 1], [], []>} : vector<8x108xf32>, vector<108x27xf32>, vector<8x27xf32> -> vector<8x27xf32>
    %118 = arith.addf %117, %113 : vector<8x27xf32>
    %cst_81 = arith.constant dense<0.000000e+00> : vector<8xf32>
    %119 = vector.multi_reduction <add>, %118, %cst_81 [1] : vector<8x27xf32> to vector<8xf32>
    %120 = vector.shape_cast %119 : vector<8xf32> to vector<8x1xf32>
    %cst_82 = arith.constant 2.700000e+01 : f32
    %121 = vector.broadcast %cst_82 : f32 to vector<8x1xf32>
    %122 = arith.divf %120, %121 : vector<8x1xf32>
    %123 = vector.broadcast %122 : vector<8x1xf32> to vector<8x27xf32>
    %124 = arith.subf %118, %123 : vector<8x27xf32>
    %125 = arith.mulf %124, %124 : vector<8x27xf32>
    %cst_83 = arith.constant dense<0.000000e+00> : vector<8xf32>
    %126 = vector.multi_reduction <add>, %125, %cst_83 [1] : vector<8x27xf32> to vector<8xf32>
    %127 = vector.shape_cast %126 : vector<8xf32> to vector<8x1xf32>
    %cst_84 = arith.constant 2.700000e+01 : f32
    %128 = vector.broadcast %cst_84 : f32 to vector<8x1xf32>
    %129 = arith.divf %127, %128 : vector<8x1xf32>
    %130 = vector.broadcast %122 : vector<8x1xf32> to vector<8x27xf32>
    %131 = arith.subf %118, %130 : vector<8x27xf32>
    %cst_85 = arith.constant 9.99999974E-6 : f32
    %132 = vector.broadcast %cst_85 : f32 to vector<8x1xf32>
    %133 = arith.addf %129, %132 : vector<8x1xf32>
    %134 = math.rsqrt %133 : vector<8x1xf32>
    %135 = vector.broadcast %134 : vector<8x1xf32> to vector<8x27xf32>
    %136 = arith.mulf %131, %135 : vector<8x27xf32>
    %c0_86 = arith.constant 0 : index
    %c0_87 = arith.constant 0 : index
    %c0_88 = arith.constant 0 : index
    %137 = vector.load %arg6[%c0_86, %c0_87, %c0_88] : memref<2x8x27xf32, #tpu.memory_space<vmem>>, vector<1x8x27xf32>
    %138 = vector.shape_cast %137 : vector<1x8x27xf32> to vector<8x27xf32>
    %139 = vector.shape_cast %136 : vector<8x27xf32> to vector<1x8x27xf32>
    tpu.vector_store %arg6[%c0_86, %c0_87, %c0_88], %139 {strides = array<i32>} : memref<2x8x27xf32, #tpu.memory_space<vmem>>, vector<1x8x27xf32>,
    %c1_89 = arith.constant 1 : index
    %c0_90 = arith.constant 0 : index
    %c0_91 = arith.constant 0 : index
    %140 = vector.load %arg1[%c1_89, %c0_90, %c0_91] : memref<2x8x27xf32, #tpu.memory_space<vmem>>, vector<1x8x27xf32>
    %141 = vector.shape_cast %140 : vector<1x8x27xf32> to vector<8x27xf32>
    %cst_92 = arith.constant dense<0.000000e+00> : vector<8x9xf32>
    %142 = tpu.matmul %141, %9, %cst_92 {dimension_numbers = #tpu.dot_dimension_numbers<[1], [0], [0], [1], [0, 0, 1, 1], [], []>} : vector<8x27xf32>, vector<27x9xf32>, vector<8x9xf32> -> vector<8x9xf32>
    %cst_93 = arith.constant dense<0.000000e+00> : vector<8x9xf32>
    %143 = tpu.matmul %141, %11, %cst_93 {dimension_numbers = #tpu.dot_dimension_numbers<[1], [0], [0], [1], [0, 0, 1, 1], [], []>} : vector<8x27xf32>, vector<27x9xf32>, vector<8x9xf32> -> vector<8x9xf32>
    %cst_94 = arith.constant dense<0.000000e+00> : vector<8x9xf32>
    %144 = tpu.matmul %141, %13, %cst_94 {dimension_numbers = #tpu.dot_dimension_numbers<[1], [0], [0], [1], [0, 0, 1, 1], [], []>} : vector<8x27xf32>, vector<27x9xf32>, vector<8x9xf32> -> vector<8x9xf32>
    %cst_95 = arith.constant dense<0.000000e+00> : vector<8x9xf32>
    %145 = tpu.matmul %141, %15, %cst_95 {dimension_numbers = #tpu.dot_dimension_numbers<[1], [0], [0], [1], [0, 0, 1, 1], [], []>} : vector<8x27xf32>, vector<27x9xf32>, vector<8x9xf32> -> vector<8x9xf32>
    %cst_96 = arith.constant dense<0.000000e+00> : vector<8x9xf32>
    %146 = tpu.matmul %141, %17, %cst_96 {dimension_numbers = #tpu.dot_dimension_numbers<[1], [0], [0], [1], [0, 0, 1, 1], [], []>} : vector<8x27xf32>, vector<27x9xf32>, vector<8x9xf32> -> vector<8x9xf32>
    %cst_97 = arith.constant dense<0.000000e+00> : vector<8x9xf32>
    %147 = tpu.matmul %141, %19, %cst_97 {dimension_numbers = #tpu.dot_dimension_numbers<[1], [0], [0], [1], [0, 0, 1, 1], [], []>} : vector<8x27xf32>, vector<27x9xf32>, vector<8x9xf32> -> vector<8x9xf32>
    %cst_98 = arith.constant dense<0.000000e+00> : vector<8x9xf32>
    %148 = tpu.matmul %141, %21, %cst_98 {dimension_numbers = #tpu.dot_dimension_numbers<[1], [0], [0], [1], [0, 0, 1, 1], [], []>} : vector<8x27xf32>, vector<27x9xf32>, vector<8x9xf32> -> vector<8x9xf32>
    %cst_99 = arith.constant dense<0.000000e+00> : vector<8x9xf32>
    %149 = tpu.matmul %141, %23, %cst_99 {dimension_numbers = #tpu.dot_dimension_numbers<[1], [0], [0], [1], [0, 0, 1, 1], [], []>} : vector<8x27xf32>, vector<27x9xf32>, vector<8x9xf32> -> vector<8x9xf32>
    %cst_100 = arith.constant dense<0.000000e+00> : vector<8x9xf32>
    %150 = tpu.matmul %141, %25, %cst_100 {dimension_numbers = #tpu.dot_dimension_numbers<[1], [0], [0], [1], [0, 0, 1, 1], [], []>} : vector<8x27xf32>, vector<27x9xf32>, vector<8x9xf32> -> vector<8x9xf32>
    %cst_101 = arith.constant 0.000000e+00 : f32
    %151 = vector.broadcast %cst_101 : f32 to vector<8x27xf32>
    %cst_102 = arith.constant dense<0.000000e+00> : vector<8x8xf32>
    %152 = tpu.matmul %142, %145, %cst_102 {dimension_numbers = #tpu.dot_dimension_numbers<[1], [1], [0], [0], [0, 0, 1, 0], [], []>} : vector<8x9xf32>, vector<8x9xf32>, vector<8x8xf32> -> vector<8x8xf32>
    %cst_103 = arith.constant 0.333333343 : f32
    %153 = vector.broadcast %cst_103 : f32 to vector<8x8xf32>
    %154 = arith.mulf %152, %153 : vector<8x8xf32>
    %cst_104 = arith.constant dense<0xFF800000> : vector<8xf32>
    %155 = vector.multi_reduction <maximumf>, %154, %cst_104 [1] : vector<8x8xf32> to vector<8xf32>
    %156 = vector.shape_cast %155 : vector<8xf32> to vector<8x1xf32>
    %157 = vector.broadcast %156 : vector<8x1xf32> to vector<8x8xf32>
    %158 = arith.subf %154, %157 : vector<8x8xf32>
    %159 = math.exp %158 : vector<8x8xf32>
    %cst_105 = arith.constant dense<0.000000e+00> : vector<8xf32>
    %160 = vector.multi_reduction <add>, %159, %cst_105 [1] : vector<8x8xf32> to vector<8xf32>
    %161 = vector.shape_cast %160 : vector<8xf32> to vector<8x1xf32>
    %162 = tpu.reciprocal %161 : vector<8x1xf32> -> vector<8x1xf32>
    %163 = vector.broadcast %162 : vector<8x1xf32> to vector<8x8xf32>
    %164 = arith.mulf %159, %163 : vector<8x8xf32>
    %c1_106 = arith.constant 1 : index
    %c0_107 = arith.constant 0 : index
    %c0_108 = arith.constant 0 : index
    %c0_109 = arith.constant 0 : index
    %165 = vector.load %arg7[%c1_106, %c0_107, %c0_108, %c0_109] : memref<2x3x8x8xf32, #tpu.memory_space<vmem>>, vector<1x1x8x8xf32>
    %166 = vector.shape_cast %165 : vector<1x1x8x8xf32> to vector<8x8xf32>
    %167 = vector.shape_cast %164 : vector<8x8xf32> to vector<1x1x8x8xf32>
    tpu.vector_store %arg7[%c1_106, %c0_107, %c0_108, %c0_109], %167 {strides = array<i32>} : memref<2x3x8x8xf32, #tpu.memory_space<vmem>>, vector<1x1x8x8xf32>,
    %cst_110 = arith.constant dense<0.000000e+00> : vector<8x9xf32>
    %168 = tpu.matmul %164, %148, %cst_110 {dimension_numbers = #tpu.dot_dimension_numbers<[1], [0], [0], [1], [0, 0, 1, 1], [], []>} : vector<8x8xf32>, vector<8x9xf32>, vector<8x9xf32> -> vector<8x9xf32>
    %cst_111 = arith.constant dense<0.000000e+00> : vector<8x27xf32>
    %169 = tpu.matmul %168, %3, %cst_111 {dimension_numbers = #tpu.dot_dimension_numbers<[1], [0], [0], [1], [0, 0, 1, 1], [], []>} : vector<8x9xf32>, vector<9x27xf32>, vector<8x27xf32> -> vector<8x27xf32>
    %170 = arith.addf %151, %169 : vector<8x27xf32>
    %cst_112 = arith.constant dense<0.000000e+00> : vector<8x8xf32>
    %171 = tpu.matmul %143, %146, %cst_112 {dimension_numbers = #tpu.dot_dimension_numbers<[1], [1], [0], [0], [0, 0, 1, 0], [], []>} : vector<8x9xf32>, vector<8x9xf32>, vector<8x8xf32> -> vector<8x8xf32>
    %cst_113 = arith.constant 0.333333343 : f32
    %172 = vector.broadcast %cst_113 : f32 to vector<8x8xf32>
    %173 = arith.mulf %171, %172 : vector<8x8xf32>
    %cst_114 = arith.constant dense<0xFF800000> : vector<8xf32>
    %174 = vector.multi_reduction <maximumf>, %173, %cst_114 [1] : vector<8x8xf32> to vector<8xf32>
    %175 = vector.shape_cast %174 : vector<8xf32> to vector<8x1xf32>
    %176 = vector.broadcast %175 : vector<8x1xf32> to vector<8x8xf32>
    %177 = arith.subf %173, %176 : vector<8x8xf32>
    %178 = math.exp %177 : vector<8x8xf32>
    %cst_115 = arith.constant dense<0.000000e+00> : vector<8xf32>
    %179 = vector.multi_reduction <add>, %178, %cst_115 [1] : vector<8x8xf32> to vector<8xf32>
    %180 = vector.shape_cast %179 : vector<8xf32> to vector<8x1xf32>
    %181 = tpu.reciprocal %180 : vector<8x1xf32> -> vector<8x1xf32>
    %182 = vector.broadcast %181 : vector<8x1xf32> to vector<8x8xf32>
    %183 = arith.mulf %178, %182 : vector<8x8xf32>
    %c1_116 = arith.constant 1 : index
    %c1_117 = arith.constant 1 : index
    %c0_118 = arith.constant 0 : index
    %c0_119 = arith.constant 0 : index
    %184 = vector.load %arg7[%c1_116, %c1_117, %c0_118, %c0_119] : memref<2x3x8x8xf32, #tpu.memory_space<vmem>>, vector<1x1x8x8xf32>
    %185 = vector.shape_cast %184 : vector<1x1x8x8xf32> to vector<8x8xf32>
    %186 = vector.shape_cast %183 : vector<8x8xf32> to vector<1x1x8x8xf32>
    tpu.vector_store %arg7[%c1_116, %c1_117, %c0_118, %c0_119], %186 {strides = array<i32>} : memref<2x3x8x8xf32, #tpu.memory_space<vmem>>, vector<1x1x8x8xf32>,
    %cst_120 = arith.constant dense<0.000000e+00> : vector<8x9xf32>
    %187 = tpu.matmul %183, %149, %cst_120 {dimension_numbers = #tpu.dot_dimension_numbers<[1], [0], [0], [1], [0, 0, 1, 1], [], []>} : vector<8x8xf32>, vector<8x9xf32>, vector<8x9xf32> -> vector<8x9xf32>
    %cst_121 = arith.constant dense<0.000000e+00> : vector<8x27xf32>
    %188 = tpu.matmul %187, %5, %cst_121 {dimension_numbers = #tpu.dot_dimension_numbers<[1], [0], [0], [1], [0, 0, 1, 1], [], []>} : vector<8x9xf32>, vector<9x27xf32>, vector<8x27xf32> -> vector<8x27xf32>
    %189 = arith.addf %170, %188 : vector<8x27xf32>
    %cst_122 = arith.constant dense<0.000000e+00> : vector<8x8xf32>
    %190 = tpu.matmul %144, %147, %cst_122 {dimension_numbers = #tpu.dot_dimension_numbers<[1], [1], [0], [0], [0, 0, 1, 0], [], []>} : vector<8x9xf32>, vector<8x9xf32>, vector<8x8xf32> -> vector<8x8xf32>
    %cst_123 = arith.constant 0.333333343 : f32
    %191 = vector.broadcast %cst_123 : f32 to vector<8x8xf32>
    %192 = arith.mulf %190, %191 : vector<8x8xf32>
    %cst_124 = arith.constant dense<0xFF800000> : vector<8xf32>
    %193 = vector.multi_reduction <maximumf>, %192, %cst_124 [1] : vector<8x8xf32> to vector<8xf32>
    %194 = vector.shape_cast %193 : vector<8xf32> to vector<8x1xf32>
    %195 = vector.broadcast %194 : vector<8x1xf32> to vector<8x8xf32>
    %196 = arith.subf %192, %195 : vector<8x8xf32>
    %197 = math.exp %196 : vector<8x8xf32>
    %cst_125 = arith.constant dense<0.000000e+00> : vector<8xf32>
    %198 = vector.multi_reduction <add>, %197, %cst_125 [1] : vector<8x8xf32> to vector<8xf32>
    %199 = vector.shape_cast %198 : vector<8xf32> to vector<8x1xf32>
    %200 = tpu.reciprocal %199 : vector<8x1xf32> -> vector<8x1xf32>
    %201 = vector.broadcast %200 : vector<8x1xf32> to vector<8x8xf32>
    %202 = arith.mulf %197, %201 : vector<8x8xf32>
    %c1_126 = arith.constant 1 : index
    %c2_127 = arith.constant 2 : index
    %c0_128 = arith.constant 0 : index
    %c0_129 = arith.constant 0 : index
    %203 = vector.load %arg7[%c1_126, %c2_127, %c0_128, %c0_129] : memref<2x3x8x8xf32, #tpu.memory_space<vmem>>, vector<1x1x8x8xf32>
    %204 = vector.shape_cast %203 : vector<1x1x8x8xf32> to vector<8x8xf32>
    %205 = vector.shape_cast %202 : vector<8x8xf32> to vector<1x1x8x8xf32>
    tpu.vector_store %arg7[%c1_126, %c2_127, %c0_128, %c0_129], %205 {strides = array<i32>} : memref<2x3x8x8xf32, #tpu.memory_space<vmem>>, vector<1x1x8x8xf32>,
    %cst_130 = arith.constant dense<0.000000e+00> : vector<8x9xf32>
    %206 = tpu.matmul %202, %150, %cst_130 {dimension_numbers = #tpu.dot_dimension_numbers<[1], [0], [0], [1], [0, 0, 1, 1], [], []>} : vector<8x8xf32>, vector<8x9xf32>, vector<8x9xf32> -> vector<8x9xf32>
    %cst_131 = arith.constant dense<0.000000e+00> : vector<8x27xf32>
    %207 = tpu.matmul %206, %7, %cst_131 {dimension_numbers = #tpu.dot_dimension_numbers<[1], [0], [0], [1], [0, 0, 1, 1], [], []>} : vector<8x9xf32>, vector<9x27xf32>, vector<8x27xf32> -> vector<8x27xf32>
    %208 = arith.addf %189, %207 : vector<8x27xf32>
    %209 = arith.addf %208, %141 : vector<8x27xf32>
    %cst_132 = arith.constant dense<0.000000e+00> : vector<8xf32>
    %210 = vector.multi_reduction <add>, %209, %cst_132 [1] : vector<8x27xf32> to vector<8xf32>
    %211 = vector.shape_cast %210 : vector<8xf32> to vector<8x1xf32>
    %cst_133 = arith.constant 2.700000e+01 : f32
    %212 = vector.broadcast %cst_133 : f32 to vector<8x1xf32>
    %213 = arith.divf %211, %212 : vector<8x1xf32>
    %214 = vector.broadcast %213 : vector<8x1xf32> to vector<8x27xf32>
    %215 = arith.subf %209, %214 : vector<8x27xf32>
    %216 = arith.mulf %215, %215 : vector<8x27xf32>
    %cst_134 = arith.constant dense<0.000000e+00> : vector<8xf32>
    %217 = vector.multi_reduction <add>, %216, %cst_134 [1] : vector<8x27xf32> to vector<8xf32>
    %218 = vector.shape_cast %217 : vector<8xf32> to vector<8x1xf32>
    %cst_135 = arith.constant 2.700000e+01 : f32
    %219 = vector.broadcast %cst_135 : f32 to vector<8x1xf32>
    %220 = arith.divf %218, %219 : vector<8x1xf32>
    %221 = vector.broadcast %213 : vector<8x1xf32> to vector<8x27xf32>
    %222 = arith.subf %209, %221 : vector<8x27xf32>
    %cst_136 = arith.constant 9.99999974E-6 : f32
    %223 = vector.broadcast %cst_136 : f32 to vector<8x1xf32>
    %224 = arith.addf %220, %223 : vector<8x1xf32>
    %225 = math.rsqrt %224 : vector<8x1xf32>
    %226 = vector.broadcast %225 : vector<8x1xf32> to vector<8x27xf32>
    %227 = arith.mulf %222, %226 : vector<8x27xf32>
    %cst_137 = arith.constant dense<0.000000e+00> : vector<8x108xf32>
    %228 = tpu.matmul %227, %0, %cst_137 {dimension_numbers = #tpu.dot_dimension_numbers<[1], [0], [0], [1], [0, 0, 1, 1], [], []>} : vector<8x27xf32>, vector<27x108xf32>, vector<8x108xf32> -> vector<8x108xf32>
    %cst_138 = arith.constant 0.000000e+00 : f32
    %229 = vector.broadcast %cst_138 : f32 to vector<8x108xf32>
    %230 = arith.maximumf %228, %229 : vector<8x108xf32>
    %cst_139 = arith.constant dense<0.000000e+00> : vector<8x27xf32>
    %231 = tpu.matmul %230, %1, %cst_139 {dimension_numbers = #tpu.dot_dimension_numbers<[1], [0], [0], [1], [0, 0, 1, 1], [], []>} : vector<8x108xf32>, vector<108x27xf32>, vector<8x27xf32> -> vector<8x27xf32>
    %232 = arith.addf %231, %227 : vector<8x27xf32>
    %cst_140 = arith.constant dense<0.000000e+00> : vector<8xf32>
    %233 = vector.multi_reduction <add>, %232, %cst_140 [1] : vector<8x27xf32> to vector<8xf32>
    %234 = vector.shape_cast %233 : vector<8xf32> to vector<8x1xf32>
    %cst_141 = arith.constant 2.700000e+01 : f32
    %235 = vector.broadcast %cst_141 : f32 to vector<8x1xf32>
    %236 = arith.divf %234, %235 : vector<8x1xf32>
    %237 = vector.broadcast %236 : vector<8x1xf32> to vector<8x27xf32>
    %238 = arith.subf %232, %237 : vector<8x27xf32>
    %239 = arith.mulf %238, %238 : vector<8x27xf32>
    %cst_142 = arith.constant dense<0.000000e+00> : vector<8xf32>
    %240 = vector.multi_reduction <add>, %239, %cst_142 [1] : vector<8x27xf32> to vector<8xf32>
    %241 = vector.shape_cast %240 : vector<8xf32> to vector<8x1xf32>
    %cst_143 = arith.constant 2.700000e+01 : f32
    %242 = vector.broadcast %cst_143 : f32 to vector<8x1xf32>
    %243 = arith.divf %241, %242 : vector<8x1xf32>
    %244 = vector.broadcast %236 : vector<8x1xf32> to vector<8x27xf32>
    %245 = arith.subf %232, %244 : vector<8x27xf32>
    %cst_144 = arith.constant 9.99999974E-6 : f32
    %246 = vector.broadcast %cst_144 : f32 to vector<8x1xf32>
    %247 = arith.addf %243, %246 : vector<8x1xf32>
    %248 = math.rsqrt %247 : vector<8x1xf32>
    %249 = vector.broadcast %248 : vector<8x1xf32> to vector<8x27xf32>
    %250 = arith.mulf %245, %249 : vector<8x27xf32>
    %c1_145 = arith.constant 1 : index
    %c0_146 = arith.constant 0 : index
    %c0_147 = arith.constant 0 : index
    %251 = vector.load %arg6[%c1_145, %c0_146, %c0_147] : memref<2x8x27xf32, #tpu.memory_space<vmem>>, vector<1x8x27xf32>
    %252 = vector.shape_cast %251 : vector<1x8x27xf32> to vector<8x27xf32>
    %253 = vector.shape_cast %250 : vector<8x27xf32> to vector<1x8x27xf32>
    tpu.vector_store %arg6[%c1_145, %c0_146, %c0_147], %253 {strides = array<i32>} : memref<2x8x27xf32, #tpu.memory_space<vmem>>, vector<1x8x27xf32>,
    return
  }
  func.func @transform_0(%arg0: i32) -> (i32, i32, i32) {
    %c0_i32 = arith.constant 0 : i32
    %c0_i32_0 = arith.constant 0 : i32
    %c0_i32_1 = arith.constant 0 : i32
    return %arg0, %c0_i32, %c0_i32_0 : i32, i32, i32
  }
  func.func @transform_1(%arg0: i32) -> (i32, i32, i32) {
    %c0_i32 = arith.constant 0 : i32
    %c0_i32_0 = arith.constant 0 : i32
    %c0_i32_1 = arith.constant 0 : i32
    %c0_i32_2 = arith.constant 0 : i32
    return %c0_i32, %c0_i32_0, %c0_i32_1 : i32, i32, i32
  }
  func.func @transform_2(%arg0: i32) -> (i32, i32, i32) {
    %c0_i32 = arith.constant 0 : i32
    %c0_i32_0 = arith.constant 0 : i32
    %c0_i32_1 = arith.constant 0 : i32
    %c0_i32_2 = arith.constant 0 : i32
    return %c0_i32, %c0_i32_0, %c0_i32_1 : i32, i32, i32
  }
  func.func @transform_3(%arg0: i32) -> (i32, i32) {
    %c0_i32 = arith.constant 0 : i32
    %c0_i32_0 = arith.constant 0 : i32
    %c0_i32_1 = arith.constant 0 : i32
    return %c0_i32, %c0_i32_0 : i32, i32
  }
  func.func @transform_4(%arg0: i32) -> (i32, i32) {
    %c0_i32 = arith.constant 0 : i32
    %c0_i32_0 = arith.constant 0 : i32
    %c0_i32_1 = arith.constant 0 : i32
    return %c0_i32, %c0_i32_0 : i32, i32
  }
  func.func @transform_5(%arg0: i32) -> (i32, i32, i32) {
    %c0_i32 = arith.constant 0 : i32
    %c0_i32_0 = arith.constant 0 : i32
    %c0_i32_1 = arith.constant 0 : i32
    return %arg0, %c0_i32, %c0_i32_0 : i32, i32, i32
  }
  func.func @transform_6(%arg0: i32) -> (i32, i32, i32, i32) {
    %c0_i32 = arith.constant 0 : i32
    %c0_i32_0 = arith.constant 0 : i32
    %c0_i32_1 = arith.constant 0 : i32
    %c0_i32_2 = arith.constant 0 : i32
    return %arg0, %c0_i32, %c0_i32_0, %c0_i32_1 : i32, i32, i32, i32
  }
}

</mosaic_0001>

<bundles_post_ra>
// kernel: tpu_custom_call.1
= control target key start
LH: loop header
LB: loop body
LE: loop exit
PB: predicated region body
PF: predicated region fallthrough
CT: control target
= control target key end

     0   :  { %12 = vsyncpa [#allocation3], 0  ;;  %vm99_vm0 = vcmask 1042432   ;;  %v4176_v3 = vmov 0.0|0.0   ;;  %vm4177_vm1 = vmmov 0   ;;  %v4178_v6 = vmov 0.0   ;;  %s4895_s0 = inlined_call_operand.vmem [shape: f32[2,8,27], index: 0, kind: input, shape index: {}]   ;;  %s4896_s1 = inlined_call_operand.vmem [shape: f32[9,27,9], index: 1, kind: input, shape index: {}]   ;;  %s4897_s2 = inlined_call_operand.vmem [shape: f32[3,9,27], index: 2, kind: input, shape index: {}]   ;;  %s4898_s3 = inlined_call_operand.vmem [shape: f32[27,108], index: 3, kind: input, shape index: {}]   ;;  %s4899_s4 = inlined_call_operand.vmem [shape: f32[108,27], index: 4, kind: input, shape index: {}]   ;;  %s4900_s5 = inlined_call_operand.hbm [shape: f32[2,8,27], index: 5, kind: output, shape index: {0}]   ;;  %s4901_s6 = inlined_call_operand.hbm [shape: f32[2,3,8,8], index: 6, kind: output, shape index: {1}]  }
   0x1   :  { %v50_v0 = vld [vmem:[%s4896_s1] sm:$0xff]  ;;  %v51_v1 = vld [vmem:[%s4896_s1 + $0x8] sm:$0xff]  ;;  %v52_v2 = vld [vmem:[%s4896_s1 + $0x10] sm:$0xff]  ;;  %3880 = vmatprep.subr.bf16.mxu1 %v4176_v3  ;;  %3894 = vmatprep.subr.bf16.mxu0 %v4176_v3  ;;  %vm4179_vm2 = vmmov 1  }
   0x2   :  { %v4229_v4 = vpack.c.bf16 %v51_v1, %v50_v0  ;;  %v53_v5 = vld [vmem:[%s4896_s1 + $0x18] sm:$0x7]  ;;  %3504 = vmatprep.mubr.msk.f32.mxu1 %vm4177_vm1, %v4178_v6  ;;  %3526 = vmatprep.mubr.msk.f32.mxu0 %vm4177_vm1, %v4178_v6  ;;  %vm4244_vm3 = vmpackc.low %vm99_vm0, %vm4179_vm2  ;;  %v3217_v9 = vld [vmem:[%s4896_s1 + $0x20] sm:$0xff] }
   0x3   :  { %v4240_v7 = vpack.c.bf16 %v53_v5, %v52_v2  ;;  %v3218_v10 = vld [vmem:[%s4896_s1 + $0x28] sm:$0xff] }
   0x4   :  { %3882 = vmatpush3.bf16.msra.mxu1 %v4229_v4 }
   0x5   :  { %3883 = vmatprep.subr.bf16.mxu1 %v4176_v3 }
   0x6   :  { %13 = vsyncpa [#allocation5], 0  ;;  %v4260_v11 = vld [vmem:[%s4895_s0] sm:$0xff]  ;;  %vm95_vm4 = vcmask 220160   ;;  %v4262_v12 = vpack.c.bf16 %v3218_v10, %v3217_v9  ;;  %v3219_v13 = vld [vmem:[%s4896_s1 + $0x30] sm:$0xff]  ;;  %vm757_vm5 = vcmask 72704  }
   0x7   :  { %v3220_v14 = vld [vmem:[%s4896_s1 + $0x38] sm:$0x7]  ;;  %v3225_v16 = vld [vmem:[%s4896_s1 + $0x60] sm:$0xff]  ;;  %v3226_v17 = vld [vmem:[%s4896_s1 + $0x68] sm:$0xff]  ;;  %vm835_vm6 = vcmask 64512   ;;  %vm1087_vm7 = vcmask 1040384  }
   0x8   :  { %3886 = vmatpush3.bf16.msk.msra.mxu1 %vm4244_vm3, %v4240_v7  ;;  %v4274_v15 = vpack.c.bf16 %v3220_v14, %v3219_v13  ;;  %v4288_v18 = vpack.c.bf16 %v3226_v17, %v3225_v16  ;;  %v3227_v19 = vld [vmem:[%s4896_s1 + $0x70] sm:$0xff]  ;;  %v3228_v20 = vld [vmem:[%s4896_s1 + $0x78] sm:$0x7]  ;;  %v3233_v22 = vld [vmem:[%s4896_s1 + $0xa0] sm:$0xff]  ;;  %vm1573_vm9 = vcmask 1043456   ;;  %vm1569_vm11 = vcmask 883712  }
   0x9   :  { %3887 = vmatprep.subr.bf16.mxu1 %v4176_v3  ;;  %v4300_v21 = vpack.c.bf16 %v3228_v20, %v3227_v19  ;;  %v3234_v23 = vld [vmem:[%s4896_s1 + $0xa8] sm:$0xff]  ;;  %v3235_v25 = vld [vmem:[%s4896_s1 + $0xb0] sm:$0xff]  ;;  %v3236_v26 = vld [vmem:[%s4896_s1 + $0xb8] sm:$0x7] }
   0xa   :  { %v4314_v24 = vpack.c.bf16 %v3234_v23, %v3233_v22  ;;  %v4329_v27 = vpack.c.bf16 %v3236_v26, %v3235_v25  ;;  %v3241_v28 = vld [vmem:[%s4896_s1 + $0xe0] sm:$0xff]  ;;  %v3242_v29 = vld [vmem:[%s4896_s1 + $0xe8] sm:$0xff]  ;;  %v3243_v31 = vld [vmem:[%s4896_s1 + $0xf0] sm:$0xff] }
   0xb   :  { %3505 = vmatmul.mubr.msk.f32.vlgmr.msra.gmra.mrb[0].mxu1 %vm95_vm4, %v4260_v11  ;;  %v4341_v30 = vpack.c.bf16 %v3242_v29, %v3241_v28  ;;  %v3244_v32 = vld [vmem:[%s4896_s1 + $0xf8] sm:$0x7]  ;;  %v3221_v44 = vld [vmem:[%s4896_s1 + $0x40] sm:$0xff]  ;;  %v3222_v45 = vld [vmem:[%s4896_s1 + $0x48] sm:$0xff] }
   0xc   :  { %3889 = vmatpush3.bf16.msra.mxu1 %v4262_v12  ;;  %3515 = vmatprep.mubr.msk.f32.mxu1 %vm4177_vm1, %v4178_v6  ;;  %v4355_v33 = vpack.c.bf16 %v3244_v32, %v3243_v31  ;;  %v3223_v46 = vld [vmem:[%s4896_s1 + $0x50] sm:$0xff]  ;;  %v4385_v47 = vpack.c.bf16 %v3222_v45, %v3221_v44  ;;  %v3224_v48 = vld [vmem:[%s4896_s1 + $0x58] sm:$0x7]  ;;  %v3229_v50 = vld [vmem:[%s4896_s1 + $0x80] sm:$0xff] }
   0xd   :  { %3890 = vmatprep.subr.bf16.mxu1 %v4176_v3  ;;  %v4391_v49 = vpack.c.bf16 %v3224_v48, %v3223_v46  ;;  %v3230_v51 = vld [vmem:[%s4896_s1 + $0x88] sm:$0xff]  ;;  %v3231_v53 = vld [vmem:[%s4896_s1 + $0x90] sm:$0xff]  ;;  %v3232_v54 = vld [vmem:[%s4896_s1 + $0x98] sm:$0x7] }
   0xe   :  { %3896 = vmatpush3.bf16.msra.mxu0 %v4385_v47  ;;  %v4403_v52 = vpack.c.bf16 %v3230_v51, %v3229_v50  ;;  %v4415_v55 = vpack.c.bf16 %v3232_v54, %v3231_v53  ;;  %v3237_v56 = vld [vmem:[%s4896_s1 + $0xc0] sm:$0xff]  ;;  %v3238_v57 = vld [vmem:[%s4896_s1 + $0xc8] sm:$0xff]  ;;  %v3239_v59 = vld [vmem:[%s4896_s1 + $0xd0] sm:$0xff] }
   0xf   :  { %3897 = vmatprep.subr.bf16.mxu0 %v4176_v3  ;;  %v4429_v58 = vpack.c.bf16 %v3238_v57, %v3237_v56  ;;  %v3240_v60 = vld [vmem:[%s4896_s1 + $0xd8] sm:$0x7]  ;;  %v3247_v44 = vld [vmem:[%s4896_s1 + $0x110] sm:$0xff]  ;;  %vm4504_vm8 = vmpackc.low %vm1087_vm7, %vm4179_vm2 }
  0x10   :  { %3893 = vmatpush3.bf16.msk.msra.mxu1 %vm4244_vm3, %v4274_v15  ;;  %v4441_v61 = vpack.c.bf16 %v3240_v60, %v3239_v59  ;;  %v3248_v46 = vld [vmem:[%s4896_s1 + $0x118] sm:$0x7]  ;;  %v3213_v50 = vld [vmem:[%s4897_s2 + $0x10] sm:$0xff]  ;;  %v42_v57 = vld [vmem:[%s4897_s2] sm:$0xff] }
  0x11   :  { %3901 = vmatprep.subr.bf16.mxu1 %v4176_v3  ;;  %v4488_v48 = vpack.c.bf16 %v3248_v46, %v3247_v44  ;;  %v3214_v51 = vld [vmem:[%s4897_s2 + $0x18] sm:$0x1]  ;;  %v43_v59 = vld [vmem:[%s4897_s2 + $0x8] sm:$0x1]  ;;  %vm4661_vm10 = vmpackc.low %vm1573_vm9, %vm4179_vm2 }
  0x12   :  { %3900 = vmatpush3.bf16.msk.msra.mxu0 %vm4244_vm3, %v4391_v49  ;;  %v4500_v53 = vpack.c.bf16 %v3214_v51, %v3213_v50 }
  0x13   :  { %3516 = vmatmul.mubr.msk.f32.vlgmr.msra.gmra.mrb[2].mxu1 %vm95_vm4, %v4260_v11  ;;  %3908 = vmatprep.subr.bf16.mxu0 %v4176_v3 }
  0x14   :  { %3903 = vmatpush3.bf16.msra.mxu1 %v4288_v18  ;;  %3537 = vmatprep.mubr.msk.f32.mxu1 %vm4177_vm1, %v4178_v6 }
  0x15   :  { %3904 = vmatprep.subr.bf16.mxu1 %v4176_v3  ;;  %3527 = vmatmul.mubr.msk.f32.vlgmr.msra.gmra.mrb[0].mxu0 %vm95_vm4, %v4260_v11 }
  0x16   :  { %3910 = vmatpush3.bf16.msra.mxu0 %v4403_v52  ;;  %3548 = vmatprep.mubr.msk.f32.mxu0 %vm4177_vm1, %v4178_v6 }
  0x17   :  { %3911 = vmatprep.subr.bf16.mxu0 %v4176_v3 }
  0x18   :  { %3907 = vmatpush3.bf16.msk.msra.mxu1 %vm4244_vm3, %v4300_v21 }
  0x19   :  { %3915 = vmatprep.subr.bf16.mxu1 %v4176_v3 }
  0x1a   :  { %3914 = vmatpush3.bf16.msk.msra.mxu0 %vm4244_vm3, %v4415_v55 }
  0x1b   :  { %3538 = vmatmul.mubr.msk.f32.vlgmr.msra.gmra.mrb[4].mxu1 %vm95_vm4, %v4260_v11  ;;  %3922 = vmatprep.subr.bf16.mxu0 %v4176_v3 }
  0x1c   :  { %3917 = vmatpush3.bf16.msra.mxu1 %v4314_v24  ;;  %3559 = vmatprep.mubr.msk.f32.mxu1 %vm4177_vm1, %v4178_v6 }
  0x1d   :  { %3918 = vmatprep.subr.bf16.mxu1 %v4176_v3  ;;  %3549 = vmatmul.mubr.msk.f32.vlgmr.msra.gmra.mrb[2].mxu0 %vm95_vm4, %v4260_v11 }
  0x1e   :  { %3924 = vmatpush3.bf16.msra.mxu0 %v4429_v58  ;;  %3570 = vmatprep.mubr.msk.f32.mxu0 %vm4177_vm1, %v4178_v6 }
  0x1f   :  { %3925 = vmatprep.subr.bf16.mxu0 %v4176_v3 }
  0x20   :  { %3921 = vmatpush3.bf16.msk.msra.mxu1 %vm4244_vm3, %v4329_v27 }
  0x21   :  { %3929 = vmatprep.subr.bf16.mxu1 %v4176_v3 }
  0x22   :  { %3928 = vmatpush3.bf16.msk.msra.mxu0 %vm4244_vm3, %v4441_v61 }
  0x23   :  { %3560 = vmatmul.mubr.msk.f32.vlgmr.msra.gmra.mrb[6].mxu1 %vm95_vm4, %v4260_v11  ;;  %3936 = vmatprep.subr.bf16.mxu0 %v4176_v3 }
  0x24   :  { %3931 = vmatpush3.bf16.msra.mxu1 %v4341_v30  ;;  %3581 = vmatprep.mubr.msk.f32.mxu1 %vm4177_vm1, %v4178_v6 }
  0x25   :  { %3932 = vmatprep.subr.bf16.mxu1 %v4176_v3  ;;  %3571 = vmatmul.mubr.msk.f32.vlgmr.msra.gmra.mrb[4].mxu0 %vm95_vm4, %v4260_v11 }
  0x26   :  { %3592 = vmatprep.mubr.msk.f32.mxu0 %vm4177_vm1, %v4178_v6 }
  0x28   :  { %3935 = vmatpush3.bf16.msk.msra.mxu1 %vm4244_vm3, %v4355_v33 }
  0x29   :  { %3595 = vmatprep.subr.mxu1 %v4178_v6 }
  0x2b   :  { %3582 = vmatmul.mubr.msk.f32.vlgmr.msra.gmra.mrb[8].mxu1 %vm95_vm4, %v4260_v11 }
  0x2c   :  { %3597 = vmatprep.mubr.msk.f32.mxu1 %vm4177_vm1, %v4178_v6 }
  0xde   :  { %v169_v34 = vpop.f32.mrb[0].mxu1 }
  0xdf   :  { %v3506_v35 = vpop.f32.mrb[1].mxu1 }
  0xe6   :  { %v4365_v36 = vpop.f32.mrb[2].mxu1 }
  0xe7   :  { %v3517_v37 = vpop.f32.mrb[3].mxu1 }
  0xe8   :  { %v4455_v2 = vpop.f32.mrb[0].mxu0 }
  0xe9   :  { %v3528_v5 = vpop.f32.mrb[1].mxu0 }
  0xee   :  { %v388_v38 = vpop.f32.mrb[4].mxu1 }
  0xef   :  { %v3539_v39 = vpop.f32.mrb[5].mxu1  ;;  %3596 = vmatpush3.xpose.msk.msra.mxu1 %vm757_vm5, %v388_v38 }
  0xf0   :  { %3600 = vmatprep.subr.mxu1 %v4178_v6  ;;  %v461_v9 = vpop.f32.mrb[2].mxu0 }
  0xf1   :  { %v3550_v10 = vpop.f32.mrb[3].mxu0 }
  0xf2   :  { %3598 = vmatmul.mubr.msk.f32.vlgmr.msra.gmra.mrb[10].mxu1 %vm757_vm5, %v169_v34 }
  0xf3   :  { %3602 = vmatprep.mubr.msk.f32.mxu1 %vm4177_vm1, %v4178_v6 }
  0xf6   :  { %v4372_v40 = vpop.f32.mrb[6].mxu1 }
  0xf7   :  { %v3561_v41 = vpop.f32.mrb[7].mxu1 }
  0xf8   :  { %v607_v20 = vpop.f32.mrb[4].mxu0 }
  0xf9   :  { %v3572_v22 = vpop.f32.mrb[5].mxu0  ;;  %3601 = vmatpush3.msra.mxu1 %v607_v20 }
  0xfa   :  { %3605 = vmatprep.subr.mxu1 %v4178_v6 }
  0xfe   :  { %v4374_v42 = vpop.f32.mrb[8].mxu1 }
  0xff   :  { %v3583_v43 = vpop.f32.mrb[9].mxu1 }
 0x100   :  { %v3246_v43 = vld [vmem:[%s4896_s1 + $0x108] sm:$0xff] }
 0x1c5   :  { %v830_v62 = vpop.f32.mrb[10].mxu1 }
 0x1c6   :  { %v834_v63 = vmul.f32 0.33333334, %v830_v62  ;;  %v3599_v0 = vpop.f32.mrb[11].mxu1  ;;  %v4522_v62 = vpack.c.bf16 %v43_v59, %v42_v57  ;;  %v24_v59 = vld [vmem:[%s4898_s3] sm:$0xff] }
 0x1c8   :  { %v836_v1 = vsel %vm835_vm6, %v834_v63, -inf }
 0x1c9   :  { %837 = vmax.xlane.f32.xlu0 %v836_v1 }
 0x256   :  { %v838_v13 = vpop.xlane.xlu0 %837 }
 0x257   :  { %v839_v14 = vsub.f32 %v834_v63, %v838_v13 }
 0x259   :  { %v840_v16 = vmul.f32 1.442695, %v839_v14 }
 0x25b   :  { %4096 = vpow2.f32 %v840_v16 }
 0x265   :  { %v4097_v17 = vpop.eup %4096 }
 0x266   :  { %v842_v19 = vsel %vm835_vm6, %v4097_v17, 0.0 }
 0x267   :  { %843 = vadd.xlane.f32.xlu0 %v842_v19 }
 0x2f4   :  { %v844_v23 = vpop.xlane.xlu0 %843 }
 0x2f5   :  { %4098 = vrcp.f32 %v844_v23 }
 0x2ff   :  { %v4099_v25 = vpop.eup %4098 }
 0x300   :  { %v846_v26 = vmul.f32 %v4099_v25, %v4097_v17 }
 0x302   :  { %847 = vst.msk [vmem:[#allocation4] sm:$0xff] %vm835_vm6, %v846_v26  ;;  %3603 = vmatmul.mubr.msk.f32.vlgmr.msra.gmra.mrb[12].mxu1 %vm835_vm6, %v846_v26 }
 0x303   :  { %3606 = vmatpush3.xpose.msk.msra.mxu1 %vm757_vm5, %v461_v9  ;;  %3607 = vmatprep.mubr.msk.f32.mxu1 %vm4177_vm1, %v4178_v6 }
 0x304   :  { %3610 = vmatprep.subr.mxu1 %v4178_v6 }
 0x306   :  { %3608 = vmatmul.mubr.msk.f32.vlgmr.msra.gmra.mrb[14].mxu1 %vm757_vm5, %v4365_v36 }
 0x307   :  { %3611 = vmatpush3.msra.mxu1 %v4374_v42  ;;  %3612 = vmatprep.mubr.msk.f32.mxu1 %vm4177_vm1, %v4178_v6  ;;  %v3245_v42 = vld [vmem:[%s4896_s1 + $0x100] sm:$0xff] }
 0x308   :  { %3947 = vmatprep.subr.bf16.mxu1 %v4176_v3  ;;  %v4482_v45 = vpack.c.bf16 %v3246_v43, %v3245_v42 }
 0x30a   :  { %3938 = vmatpush3.bf16.msra.mxu0 %v4482_v45 }
 0x30b   :  { %3939 = vmatprep.subr.bf16.mxu0 %v4176_v3 }
 0x30e   :  { %3942 = vmatpush3.bf16.msk.msra.mxu0 %vm4244_vm3, %v4488_v48 }
 0x30f   :  { %3943 = vmatprep.subr.bf16.mxu0 %v4176_v3 }
 0x311   :  { %3593 = vmatmul.mubr.msk.f32.vlgmr.msra.gmra.mrb[6].mxu0 %vm95_vm4, %v4260_v11 }
 0x312   :  { %3946 = vmatpush3.bf16.msk.msra.mxu0 %vm4504_vm8, %v4500_v53  ;;  %3619 = vmatprep.mubr.msk.f32.mxu0 %vm4177_vm1, %v4178_v6 }
 0x313   :  { %3629 = vmatprep.subr.mxu0 %v4178_v6 }
 0x3d5   :  { %v917_v28 = vpop.f32.mrb[12].mxu1 }
 0x3d6   :  { %v3604_v29 = vpop.f32.mrb[13].mxu1 }
 0x3d9   :  { %v993_v31 = vpop.f32.mrb[14].mxu1 }
 0x3da   :  { %v997_v32 = vmul.f32 0.33333334, %v993_v31  ;;  %v3609_v34 = vpop.f32.mrb[15].mxu1  ;;  %v3216_v31 = vld [vmem:[%s4897_s2 + $0x28] sm:$0x1] }
 0x3dc   :  { %v998_v35 = vsel %vm835_vm6, %v997_v32, -inf }
 0x3dd   :  { %999 = vmax.xlane.f32.xlu1 %v998_v35 }
 0x3e4   :  { %v753_v0 = vpop.f32.mrb[6].mxu0 }
 0x3e5   :  { %v3594_v1 = vpop.f32.mrb[7].mxu0 }
 0x46a   :  { %v1000_v37 = vpop.xlane.xlu1 %999 }
 0x46b   :  { %v1001_v38 = vsub.f32 %v997_v32, %v1000_v37 }
 0x46d   :  { %v1002_v39 = vmul.f32 1.442695, %v1001_v38 }
 0x46f   :  { %4100 = vpow2.f32 %v1002_v39 }
 0x479   :  { %v4101_v36 = vpop.eup %4100 }
 0x47a   :  { %v1004_v41 = vsel %vm835_vm6, %v4101_v36, 0.0 }
 0x47b   :  { %1005 = vadd.xlane.f32.xlu1 %v1004_v41 }
 0x508   :  { %v1006_v56 = vpop.xlane.xlu1 %1005 }
 0x509   :  { %4102 = vrcp.f32 %v1006_v56 }
 0x513   :  { %v4103_v60 = vpop.eup %4102 }
 0x514   :  { %v1008_v63 = vmul.f32 %v4103_v60, %v4101_v36  ;;  %v25_v60 = vld [vmem:[%s4898_s3 + $0x8] sm:$0xff] }
 0x516   :  { %1010 = vst.msk [vmem:[#allocation4 + $0x8] sm:$0xff] %vm835_vm6, %v1008_v63  ;;  %3613 = vmatmul.mubr.msk.f32.vlgmr.msra.gmra.mrb[16].mxu1 %vm835_vm6, %v1008_v63  ;;  %v4579_v63 = vpack.c.bf16 %v25_v60, %v24_v59 }
 0x517   :  { %3950 = vmatpush3.bf16.msk.msra.mxu1 %vm4504_vm8, %v4522_v62  ;;  %3626 = vmatprep.mubr.msk.f32.mxu1 %vm4177_vm1, %v4178_v6 }
 0x518   :  { %3634 = vmatprep.subr.mxu1 %v4178_v6 }
 0x51a   :  { %3627 = vmatmul.mubr.msk.f32.vlgmr.msra.gmra.mrb[18].mxu1 %vm757_vm5, %v917_v28 }
 0x51b   :  { %3636 = vmatprep.mubr.msk.f32.mxu1 %vm4177_vm1, %v4178_v6  ;;  %3635 = vmatpush3.msra.mxu1 %v753_v0  ;;  %v27_v0 = vld [vmem:[%s4898_s3 + $0x18] sm:$0x7] }
 0x51c   :  { %3955 = vmatprep.subr.bf16.mxu1 %v4176_v3 }
 0x5e9   :  { %v1080_v5 = vpop.f32.mrb[16].mxu1 }
 0x5ea   :  { %v3614_v9 = vpop.f32.mrb[17].mxu1  ;;  %3620 = vmatmul.mubr.msk.f32.vlgmr.msra.gmra.mrb[8].mxu0 %vm757_vm5, %v1080_v5  ;;  %v28_v5 = vld [vmem:[%s4899_s4] sm:$0xff] }
 0x5eb   :  { %3630 = vmatpush3.xpose.msk.msra.mxu0 %vm757_vm5, %v4372_v40  ;;  %3631 = vmatprep.mubr.msk.f32.mxu0 %vm4177_vm1, %v4178_v6  ;;  %v29_v9 = vld [vmem:[%s4899_s4 + $0x8] sm:$0xff] }
 0x5ec   :  { %3951 = vmatprep.subr.bf16.mxu0 %v4176_v3 }
 0x5ed   :  { %v1233_v10 = vpop.f32.mrb[18].mxu1 }
 0x5ee   :  { %v3628_v13 = vpop.f32.mrb[19].mxu1  ;;  %3632 = vmatmul.mubr.msk.f32.vlgmr.msra.gmra.mrb[10].mxu0 %vm757_vm5, %v4455_v2  ;;  %v3215_v2 = vld [vmem:[%s4897_s2 + $0x20] sm:$0xff] }
 0x5ef   :  { %3643 = vmatprep.mubr.msk.f32.mxu0 %vm4177_vm1, %v4178_v6  ;;  %v4554_v32 = vpack.c.bf16 %v3216_v31, %v3215_v2  ;;  %v4601_v13 = vpack.c.bf16 %v29_v9, %v28_v5  ;;  %v39_v2 = vld [vmem:[%s4899_s4 + $0x58] sm:$0xff] }
 0x5f1   :  { %3954 = vmatpush3.bf16.msk.msra.mxu0 %vm4504_vm8, %v4554_v32 }
 0x5f2   :  { %3962 = vmatprep.subr.bf16.mxu0 %v4176_v3 }
 0x6bd   :  { %v1157_v14 = vpop.f32.mrb[8].mxu0 }
 0x6be   :  { %v1234_v16 = vadd.f32 %v1233_v10, %v1157_v14  ;;  %v3621_v17 = vpop.f32.mrb[9].mxu0  ;;  %v30_v10 = vld [vmem:[%s4899_s4 + $0x10] sm:$0xff]  ;;  %v31_v14 = vld [vmem:[%s4899_s4 + $0x18] sm:$0xff] }
 0x6bf   :  { %v32_v17 = vld [vmem:[%s4899_s4 + $0x20] sm:$0xff] }
 0x6c1   :  { %v1309_v19 = vpop.f32.mrb[10].mxu0 }
 0x6c2   :  { %v1313_v20 = vmul.f32 0.33333334, %v1309_v19  ;;  %v3633_v22 = vpop.f32.mrb[11].mxu0  ;;  %v33_v19 = vld [vmem:[%s4899_s4 + $0x28] sm:$0xff] }
 0x6c3   :  { %v34_v22 = vld [vmem:[%s4899_s4 + $0x30] sm:$0xff] }
 0x6c4   :  { %v1314_v40 = vsel %vm835_vm6, %v1313_v20, -inf }
 0x6c5   :  { %1315 = vmax.xlane.f32.xlu0 %v1314_v40  ;;  %v35_v40 = vld [vmem:[%s4899_s4 + $0x38] sm:$0xff] }
 0x752   :  { %v1316_v23 = vpop.xlane.xlu0 %1315 }
 0x753   :  { %v1317_v25 = vsub.f32 %v1313_v20, %v1316_v23  ;;  %v4617_v20 = vpack.c.bf16 %v33_v19, %v32_v17  ;;  %v4627_v23 = vpack.c.bf16 %v35_v40, %v34_v22 }
 0x755   :  { %v1318_v26 = vmul.f32 1.442695, %v1317_v25  ;;  %v36_v25 = vld [vmem:[%s4899_s4 + $0x40] sm:$0xff] }
 0x757   :  { %4104 = vpow2.f32 %v1318_v26  ;;  %v37_v26 = vld [vmem:[%s4899_s4 + $0x48] sm:$0xff] }
 0x761   :  { %v4105_v28 = vpop.eup %4104 }
 0x762   :  { %v1320_v29 = vsel %vm835_vm6, %v4105_v28, 0.0 }
 0x763   :  { %1321 = vadd.xlane.f32.xlu1 %v1320_v29  ;;  %v38_v29 = vld [vmem:[%s4899_s4 + $0x50] sm:$0xff] }
 0x764   :  { %v4647_v31 = vpack.c.bf16 %v39_v2, %v38_v29 }
 0x7f0   :  { %v1322_v34 = vpop.xlane.xlu1 %1321 }
 0x7f1   :  { %4106 = vrcp.f32 %v1322_v34  ;;  %v40_v34 = vld [vmem:[%s4899_s4 + $0x60] sm:$0xff] }
 0x7fb   :  { %v4107_v35 = vpop.eup %4106 }
 0x7fc   :  { %v1324_v37 = vmul.f32 %v4107_v35, %v4105_v28  ;;  %v4637_v28 = vpack.c.bf16 %v37_v26, %v36_v25  ;;  %v41_v35 = vld [vmem:[%s4899_s4 + $0x68] sm:$0xf] }
 0x7fe   :  { %1326 = vst.msk [vmem:[#allocation4 + $0x10] sm:$0xff] %vm835_vm6, %v1324_v37  ;;  %3637 = vmatmul.mubr.msk.f32.vlgmr.msra.gmra.mrb[20].mxu1 %vm835_vm6, %v1324_v37  ;;  %v4657_v37 = vpack.c.bf16 %v41_v35, %v40_v34 }
 0x7ff   :  { %3654 = vmatprep.mubr.msk.f32.mxu1 %vm4177_vm1, %v4178_v6  ;;  %3957 = vmatpush3.bf16.msra.mxu1 %v4579_v63 }
 0x800   :  { %3958 = vmatprep.subr.bf16.mxu1 %v4176_v3 }
 0x8d1   :  { %v1396_v38 = vpop.f32.mrb[20].mxu1 }
 0x8d2   :  { %v3638_v39 = vpop.f32.mrb[21].mxu1  ;;  %3644 = vmatmul.mubr.msk.f32.vlgmr.msra.gmra.mrb[12].mxu0 %vm757_vm5, %v1396_v38 }
 0x8d3   :  { %3685 = vmatprep.mubr.msk.f32.mxu0 %vm4177_vm1, %v4178_v6  ;;  %3964 = vmatpush3.bf16.msra.mxu0 %v4601_v13 }
 0x8d4   :  { %3965 = vmatprep.subr.bf16.mxu0 %v4176_v3 }
 0x9a5   :  { %v1472_v36 = vpop.f32.mrb[12].mxu0 }
 0x9a6   :  { %v1476_v41 = vadd.f32 %v1472_v36, %v1234_v16  ;;  %v3645_v42 = vpop.f32.mrb[13].mxu0  ;;  %v4607_v16 = vpack.c.bf16 %v31_v14, %v30_v10 }
 0x9a8   :  { %v1477_v43 = vadd.f32 %v1476_v41, %v4260_v11  ;;  %v26_v11 = vld [vmem:[%s4898_s3 + $0x10] sm:$0xff]  ;;  %3967 = vmatpush3.bf16.msra.mxu0 %v4607_v16 }
 0x9a9   :  { %v4585_v1 = vpack.c.bf16 %v27_v0, %v26_v11  ;;  %3968 = vmatprep.subr.bf16.mxu0 %v4176_v3 }
 0x9aa   :  { %v1478_v44 = vsel %vm95_vm4, %v1477_v43, 0.0 }
 0x9ab   :  { %1479 = vadd.xlane.f32.xlu0 %v1478_v44  ;;  %3961 = vmatpush3.bf16.msk.msra.mxu1 %vm4244_vm3, %v4585_v1  ;;  %v4683_v44 = vld [vmem:[%s4895_s0 + $0x8] sm:$0xff]  ;;  %s4180_s0 = smov [#allocation4]  }
 0x9ac   :  { %3984 = vmatprep.subr.bf16.mxu1 %v4176_v3  ;;  %3970 = vmatpush3.bf16.msra.mxu0 %v4617_v20  ;;  %s3198_s19 = sshll.u32 %s4180_s0, 4  ;;  %s3199_s19 = int_to_ptr.vmem [resolvable:$true] %s3198_s19 }
 0x9ad   :  { %3971 = vmatprep.subr.bf16.mxu0 %v4176_v3  ;;  %s4128_s20 = scalar_lea.vmem %s3199_s19, 768  ;;  %p4133_p1 = scmp.lt.s32.totalorder %s3199_s19, %s3199_s19 }
 0x9ae   :  { %p4129_p0 = scmp.ne.s32.totalorder %s3199_s19, %s4128_s20  ;;  %p4134_p2 = scmp.lt.s32.totalorder %s4128_s20, %s4128_s20 }
 0x9b0   :  { %3973 = vmatpush3.bf16.msra.mxu0 %v4627_v23  ;;  %p4135_p3 = por %p4134_p2, %p4133_p1 }
 0x9b1   :  { %3974 = vmatprep.subr.bf16.mxu0 %v4176_v3 }
 0x9b2   :  { %p4136_p4 = pnand %p4135_p3, %p4129_p0 }
 0x9b4   :  { %3976 = vmatpush3.bf16.msra.mxu0 %v4637_v28 }
 0x9b5   :  { %3977 = vmatprep.subr.bf16.mxu0 %v4176_v3 }
 0x9b8   :  { %3979 = vmatpush3.bf16.msra.mxu0 %v4647_v31 }
 0x9b9   :  { %3980 = vmatprep.subr.bf16.mxu0 %v4176_v3 }
 0x9bc   :  { %3983 = vmatpush3.bf16.msk.msra.mxu0 %vm4661_vm10, %v4657_v37 }
 0x9bd   :  { %4005 = vmatprep.subr.bf16.mxu0 %v4176_v3 }
 0xa38   :  { %v1480_v46 = vpop.xlane.xlu0 %1479 }
 0xa39   :  { %v1482_v50 = vmul.f32 0.037037037, %v1480_v46 }
 0xa3b   :  { %v1483_v51 = vsub.f32 %v1477_v43, %v1482_v50 }
 0xa3d   :  { %v1484_v56 = vmul.f32 %v1483_v51, %v1483_v51 }
 0xa3f   :  { %v1485_v57 = vsel %vm95_vm4, %v1484_v56, 0.0 }
 0xa40   :  { %1486 = vadd.xlane.f32.xlu1 %v1485_v57 }
 0xacd   :  { %v1487_v39 = vpop.xlane.xlu1 %1486 }
 0xace   :  { %v1488_v36 = vmul.f32 0.037037037, %v1487_v39 }
 0xad0   :  { %v1489_v41 = vadd.f32 1e-05, %v1488_v36 }
 0xad2   :  { %4108 = vrsqrt.f32 %v1489_v41 }
 0xadc   :  { %v4109_v42 = vpop.eup %4108 }
 0xadd   :  { %v4669_v43 = vmul.f32 %v4109_v42, %v1483_v51 }
 0xadf   :  { %3655 = vmatmul.mubr.msk.f32.vlgmr.msra.gmra.mrb[22].mxu1 %vm95_vm4, %v4669_v43 }
 0xae0   :  { %3986 = vmatpush3.bf16.msra.mxu1 %v4229_v4  ;;  %3696 = vmatprep.mubr.msk.f32.mxu1 %vm4177_vm1, %v4178_v6 }
 0xae1   :  { %3987 = vmatprep.subr.bf16.mxu1 %v4176_v3 }
 0xae4   :  { %3990 = vmatpush3.bf16.msk.msra.mxu1 %vm4244_vm3, %v4240_v7 }
 0xae5   :  { %3991 = vmatprep.subr.bf16.mxu1 %v4176_v3 }
 0xae7   :  { %3697 = vmatmul.mubr.msk.f32.vlgmr.msra.gmra.mrb[24].mxu1 %vm95_vm4, %v4683_v44 }
 0xae8   :  { %3993 = vmatpush3.bf16.msra.mxu1 %v4262_v12  ;;  %3707 = vmatprep.mubr.msk.f32.mxu1 %vm4177_vm1, %v4178_v6 }
 0xae9   :  { %3994 = vmatprep.subr.bf16.mxu1 %v4176_v3 }
 0xaec   :  { %3997 = vmatpush3.bf16.msk.msra.mxu1 %vm4244_vm3, %v4274_v15 }
 0xaed   :  { %3998 = vmatprep.subr.bf16.mxu1 %v4176_v3 }
 0xaef   :  { %3708 = vmatmul.mubr.msk.f32.vlgmr.msra.gmra.mrb[26].mxu1 %vm95_vm4, %v4683_v44 }
 0xaf0   :  { %4000 = vmatpush3.bf16.msra.mxu1 %v4385_v47  ;;  %3718 = vmatprep.mubr.msk.f32.mxu1 %vm4177_vm1, %v4178_v6 }
 0xaf1   :  { %4001 = vmatprep.subr.bf16.mxu1 %v4176_v3 }
 0xaf4   :  { %4004 = vmatpush3.bf16.msk.msra.mxu1 %vm4244_vm3, %v4391_v49 }
 0xaf5   :  { %4012 = vmatprep.subr.bf16.mxu1 %v4176_v3 }
 0xaf7   :  { %3719 = vmatmul.mubr.msk.f32.vlgmr.msra.gmra.mrb[28].mxu1 %vm95_vm4, %v4683_v44 }
 0xaf8   :  { %4014 = vmatpush3.bf16.msra.mxu1 %v4403_v52  ;;  %3740 = vmatprep.mubr.msk.f32.mxu1 %vm4177_vm1, %v4178_v6 }
 0xaf9   :  { %4015 = vmatprep.subr.bf16.mxu1 %v4176_v3 }
 0xafc   :  { %4018 = vmatpush3.bf16.msk.msra.mxu1 %vm4244_vm3, %v4415_v55 }
 0xafd   :  { %4026 = vmatprep.subr.bf16.mxu1 %v4176_v3 }
 0xaff   :  { %3741 = vmatmul.mubr.msk.f32.vlgmr.msra.gmra.mrb[30].mxu1 %vm95_vm4, %v4683_v44 }
 0xb00   :  { %4028 = vmatpush3.bf16.msra.mxu1 %v4429_v58  ;;  %3762 = vmatprep.mubr.msk.f32.mxu1 %vm4177_vm1, %v4178_v6 }
 0xb01   :  { %4029 = vmatprep.subr.bf16.mxu1 %v4176_v3 }
 0xb04   :  { %4032 = vmatpush3.bf16.msk.msra.mxu1 %vm4244_vm3, %v4441_v61 }
 0xb05   :  { %4040 = vmatprep.subr.bf16.mxu1 %v4176_v3 }
 0xb07   :  { %3763 = vmatmul.mubr.msk.f32.vlgmr.msra.gmra.mrb[32].mxu1 %vm95_vm4, %v4683_v44 }
 0xb08   :  { %4042 = vmatpush3.bf16.msra.mxu1 %v4482_v45  ;;  %3784 = vmatprep.mubr.msk.f32.mxu1 %vm4177_vm1, %v4178_v6 }
 0xb09   :  { %4043 = vmatprep.subr.bf16.mxu1 %v4176_v3 }
 0xb0c   :  { %4046 = vmatpush3.bf16.msk.msra.mxu1 %vm4244_vm3, %v4488_v48 }
 0xb0d   :  { %3792 = vmatprep.subr.mxu1 %v4178_v6 }
 0xb0f   :  { %3785 = vmatmul.mubr.msk.f32.vlgmr.msra.gmra.mrb[34].mxu1 %vm95_vm4, %v4683_v44 }
 0xb10   :  { %3794 = vmatprep.mubr.msk.f32.mxu1 %vm4177_vm1, %v4178_v6 }
 0xbb2   :  { %v1564_v4 = vpop.f32.mrb[22].mxu1 }
 0xbb3   :  { %v1568_v7 = vmax.f32 %v1564_v4, 0.0  ;;  %v3656_v12 = vpop.f32.mrb[23].mxu1 }
 0xbb5   :  { %3686 = vmatmul.mubr.msk.f32.vlgmr.msra.gmra.mrb[14].mxu0 %vm1569_vm11, %v1568_v7 }
 0xbb6   :  { %4007 = vmatpush3.bf16.msra.mxu0 %v4288_v18  ;;  %3729 = vmatprep.mubr.msk.f32.mxu0 %vm4177_vm1, %v4178_v6 }
 0xbb7   :  { %4008 = vmatprep.subr.bf16.mxu0 %v4176_v3 }
 0xbba   :  { %4011 = vmatpush3.bf16.msk.msra.mxu0 %vm4244_vm3, %v4300_v21  ;;  %v1732_v15 = vpop.f32.mrb[24].mxu1 }
 0xbbb   :  { %4019 = vmatprep.subr.bf16.mxu0 %v4176_v3  ;;  %v3698_v47 = vpop.f32.mrb[25].mxu1 }
 0xbbd   :  { %3730 = vmatmul.mubr.msk.f32.vlgmr.msra.gmra.mrb[16].mxu0 %vm95_vm4, %v4683_v44 }
 0xbbe   :  { %4021 = vmatpush3.bf16.msra.mxu0 %v4314_v24  ;;  %3751 = vmatprep.mubr.msk.f32.mxu0 %vm4177_vm1, %v4178_v6 }
 0xbbf   :  { %4022 = vmatprep.subr.bf16.mxu0 %v4176_v3 }
 0xbc2   :  { %4025 = vmatpush3.bf16.msk.msra.mxu0 %vm4244_vm3, %v4329_v27  ;;  %v1802_v18 = vpop.f32.mrb[26].mxu1 }
 0xbc3   :  { %4033 = vmatprep.subr.bf16.mxu0 %v4176_v3  ;;  %v3709_v21 = vpop.f32.mrb[27].mxu1 }
 0xbc5   :  { %3752 = vmatmul.mubr.msk.f32.vlgmr.msra.gmra.mrb[18].mxu0 %vm95_vm4, %v4683_v44 }
 0xbc6   :  { %4035 = vmatpush3.bf16.msra.mxu0 %v4341_v30  ;;  %3773 = vmatprep.mubr.msk.f32.mxu0 %vm4177_vm1, %v4178_v6 }
 0xbc7   :  { %4036 = vmatprep.subr.bf16.mxu0 %v4176_v3 }
 0xbca   :  { %4039 = vmatpush3.bf16.msk.msra.mxu0 %vm4244_vm3, %v4355_v33  ;;  %v4773_v24 = vpop.f32.mrb[28].mxu1 }
 0xbcb   :  { %3787 = vmatprep.subr.mxu0 %v4178_v6  ;;  %v3720_v27 = vpop.f32.mrb[29].mxu1 }
 0xbcd   :  { %3774 = vmatmul.mubr.msk.f32.vlgmr.msra.gmra.mrb[20].mxu0 %vm95_vm4, %v4683_v44 }
 0xbce   :  { %3789 = vmatprep.mubr.msk.f32.mxu0 %vm4177_vm1, %v4178_v6 }
 0xbd2   :  { %v2012_v30 = vpop.f32.mrb[30].mxu1 }
 0xbd3   :  { %v3742_v49 = vpop.f32.mrb[31].mxu1 }
 0xbda   :  { %v2152_v26 = vpop.f32.mrb[32].mxu1 }
 0xbdb   :  { %v3764_v29 = vpop.f32.mrb[33].mxu1  ;;  %3793 = vmatpush3.msra.mxu1 %v2152_v26 }
 0xbdc   :  { %3802 = vmatprep.subr.mxu1 %v4178_v6 }
 0xbe2   :  { %v2292_v2 = vpop.f32.mrb[34].mxu1 }
 0xbe3   :  { %v3786_v34 = vpop.f32.mrb[35].mxu1 }
 0xc88   :  { %v4775_v52 = vpop.f32.mrb[14].mxu0 }
 0xc89   :  { %v3687_v55 = vpop.f32.mrb[15].mxu0 }
 0xc90   :  { %v1942_v58 = vpop.f32.mrb[16].mxu0 }
 0xc91   :  { %v3731_v61 = vpop.f32.mrb[17].mxu0  ;;  %3788 = vmatpush3.xpose.msk.msra.mxu0 %vm757_vm5, %v1942_v58 }
 0xc92   :  { %3797 = vmatprep.subr.mxu0 %v4178_v6 }
 0xc94   :  { %3790 = vmatmul.mubr.msk.f32.vlgmr.msra.gmra.mrb[22].mxu0 %vm757_vm5, %v1732_v15 }
 0xc95   :  { %3798 = vmatpush3.xpose.msk.msra.mxu0 %vm757_vm5, %v2012_v30  ;;  %3799 = vmatprep.mubr.msk.f32.mxu0 %vm4177_vm1, %v4178_v6 }
 0xc96   :  { %4047 = vmatprep.subr.bf16.mxu0 %v4176_v3 }
 0xc98   :  { %3800 = vmatmul.mubr.msk.f32.vlgmr.msra.gmra.mrb[24].mxu0 %vm757_vm5, %v1802_v18  ;;  %v4785_v33 = vpop.f32.mrb[18].mxu0 }
 0xc99   :  { %v3753_v45 = vpop.f32.mrb[19].mxu0  ;;  %4050 = vmatpush3.bf16.msk.msra.mxu0 %vm4504_vm8, %v4500_v53  ;;  %3811 = vmatprep.mubr.msk.f32.mxu0 %vm4177_vm1, %v4178_v6 }
 0xc9a   :  { %3821 = vmatprep.subr.mxu0 %v4178_v6 }
 0xca0   :  { %v2222_v48 = vpop.f32.mrb[20].mxu0 }
 0xca1   :  { %v3775_v46 = vpop.f32.mrb[21].mxu0 }
 0xd67   :  { %v2368_v50 = vpop.f32.mrb[22].mxu0 }
 0xd68   :  { %v2372_v51 = vmul.f32 0.33333334, %v2368_v50  ;;  %v3791_v56 = vpop.f32.mrb[23].mxu0 }
 0xd6a   :  { %v2373_v57 = vsel %vm835_vm6, %v2372_v51, -inf }
 0xd6b   :  { %2374 = vmax.xlane.f32.xlu0 %v2373_v57  ;;  %v2531_v59 = vpop.f32.mrb[24].mxu0 }
 0xd6c   :  { %v2535_v60 = vmul.f32 0.33333334, %v2531_v59  ;;  %v3801_v11 = vpop.f32.mrb[25].mxu0 }
 0xd6e   :  { %v2536_v0 = vsel %vm835_vm6, %v2535_v60, -inf }
 0xd6f   :  { %2537 = vmax.xlane.f32.xlu1 %v2536_v0 }
 0xdf8   :  { %v2375_v53 = vpop.xlane.xlu0 %2374 }
 0xdf9   :  { %v2376_v5 = vsub.f32 %v2372_v51, %v2375_v53 }
 0xdfb   :  { %v2377_v9 = vmul.f32 1.442695, %v2376_v5 }
 0xdfc   :  { %v2538_v10 = vpop.xlane.xlu1 %2537 }
 0xdfd   :  { %4110 = vpow2.f32 %v2377_v9  ;;  %v2539_v14 = vsub.f32 %v2535_v60, %v2538_v10 }
 0xdff   :  { %v2540_v17 = vmul.f32 1.442695, %v2539_v14 }
 0xe01   :  { %4112 = vpow2.f32 %v2540_v17 }
 0xe07   :  { %v4111_v19 = vpop.eup %4110 }
 0xe08   :  { %v2379_v22 = vsel %vm835_vm6, %v4111_v19, 0.0 }
 0xe09   :  { %2380 = vadd.xlane.f32.xlu0 %v2379_v22 }
 0xe0b   :  { %v4113_v40 = vpop.eup %4112 }
 0xe0c   :  { %v2542_v25 = vsel %vm835_vm6, %v4113_v40, 0.0 }
 0xe0d   :  { %2543 = vadd.xlane.f32.xlu1 %v2542_v25 }
 0xe96   :  { %v2381_v35 = vpop.xlane.xlu0 %2380 }
 0xe97   :  { %4114 = vrcp.f32 %v2381_v35 }
 0xe9a   :  { %v2544_v39 = vpop.xlane.xlu1 %2543 }
 0xe9b   :  { %4116 = vrcp.f32 %v2544_v39 }
 0xea1   :  { %v4115_v36 = vpop.eup %4114 }
 0xea2   :  { %v2383_v41 = vmul.f32 %v4115_v36, %v4111_v19 }
 0xea4   :  { %2385 = vst.msk [vmem:[#allocation4 + $0x18] sm:$0xff] %vm835_vm6, %v2383_v41  ;;  %3795 = vmatmul.mubr.msk.f32.vlgmr.msra.gmra.mrb[36].mxu1 %vm835_vm6, %v2383_v41 }
 0xea5   :  { %v4117_v42 = vpop.eup %4116  ;;  %3803 = vmatpush3.msra.mxu1 %v2222_v48  ;;  %3804 = vmatprep.mubr.msk.f32.mxu1 %vm4177_vm1, %v4178_v6 }
 0xea6   :  { %v2546_v4 = vmul.f32 %v4117_v42, %v4113_v40  ;;  %4051 = vmatprep.subr.bf16.mxu1 %v4176_v3 }
 0xea8   :  { %2548 = vst.msk [vmem:[#allocation4 + $0x20] sm:$0xff] %vm835_vm6, %v2546_v4  ;;  %3805 = vmatmul.mubr.msk.f32.vlgmr.msra.gmra.mrb[38].mxu1 %vm835_vm6, %v2546_v4 }
 0xea9   :  { %4054 = vmatpush3.bf16.msk.msra.mxu1 %vm4504_vm8, %v4522_v62  ;;  %3818 = vmatprep.mubr.msk.f32.mxu1 %vm4177_vm1, %v4178_v6 }
 0xeaa   :  { %3826 = vmatprep.subr.mxu1 %v4178_v6 }
 0xf77   :  { %v2455_v7 = vpop.f32.mrb[36].mxu1 }
 0xf78   :  { %v3796_v12 = vpop.f32.mrb[37].mxu1  ;;  %3819 = vmatmul.mubr.msk.f32.vlgmr.msra.gmra.mrb[40].mxu1 %vm757_vm5, %v2455_v7 }
 0xf79   :  { %3827 = vmatpush3.msra.mxu1 %v2292_v2  ;;  %3828 = vmatprep.mubr.msk.f32.mxu1 %vm4177_vm1, %v4178_v6 }
 0xf7a   :  { %4059 = vmatprep.subr.bf16.mxu1 %v4176_v3 }
 0xf7b   :  { %v2618_v15 = vpop.f32.mrb[38].mxu1 }
 0xf7c   :  { %v3806_v47 = vpop.f32.mrb[39].mxu1  ;;  %3812 = vmatmul.mubr.msk.f32.vlgmr.msra.gmra.mrb[26].mxu0 %vm757_vm5, %v2618_v15 }
 0xf7d   :  { %3822 = vmatpush3.xpose.msk.msra.mxu0 %vm757_vm5, %v4785_v33  ;;  %3823 = vmatprep.mubr.msk.f32.mxu0 %vm4177_vm1, %v4178_v6 }
 0xf7e   :  { %4055 = vmatprep.subr.bf16.mxu0 %v4176_v3 }
 0xf80   :  { %3824 = vmatmul.mubr.msk.f32.vlgmr.msra.gmra.mrb[28].mxu0 %vm757_vm5, %v4773_v24 }
 0xf81   :  { %4058 = vmatpush3.bf16.msk.msra.mxu0 %vm4504_vm8, %v4554_v32  ;;  %3835 = vmatprep.mubr.msk.f32.mxu0 %vm4177_vm1, %v4178_v6 }
 0xf82   :  { %4066 = vmatprep.subr.bf16.mxu0 %v4176_v3 }
0x104b   :  { %v2764_v62 = vpop.f32.mrb[40].mxu1 }
0x104c   :  { %v3820_v18 = vpop.f32.mrb[41].mxu1 }
0x104f   :  { %v2691_v21 = vpop.f32.mrb[26].mxu0 }
0x1050   :  { %v2765_v27 = vadd.f32 %v2764_v62, %v2691_v21  ;;  %v3813_v30 = vpop.f32.mrb[27].mxu0 }
0x1053   :  { %v2840_v49 = vpop.f32.mrb[28].mxu0 }
0x1054   :  { %v2844_v55 = vmul.f32 0.33333334, %v2840_v49  ;;  %v3825_v58 = vpop.f32.mrb[29].mxu0 }
0x1056   :  { %v2845_v61 = vsel %vm835_vm6, %v2844_v55, -inf }
0x1057   :  { %2846 = vmax.xlane.f32.xlu0 %v2845_v61 }
0x10e4   :  { %v2847_v24 = vpop.xlane.xlu0 %2846 }
0x10e5   :  { %v2848_v33 = vsub.f32 %v2844_v55, %v2847_v24 }
0x10e7   :  { %v2849_v54 = vmul.f32 1.442695, %v2848_v33 }
0x10e9   :  { %4118 = vpow2.f32 %v2849_v54 }
0x10f3   :  { %v4119_v32 = vpop.eup %4118 }
0x10f4   :  { %v2851_v45 = vsel %vm835_vm6, %v4119_v32, 0.0 }
0x10f5   :  { %2852 = vadd.xlane.f32.xlu1 %v2851_v45 }
0x1182   :  { %v2853_v48 = vpop.xlane.xlu1 %2852 }
0x1183   :  { %4120 = vrcp.f32 %v2853_v48 }
0x118d   :  { %v4121_v46 = vpop.eup %4120 }
0x118e   :  { %v2855_v50 = vmul.f32 %v4121_v46, %v4119_v32 }
0x1190   :  { %2857 = vst.msk [vmem:[#allocation4 + $0x28] sm:$0xff] %vm835_vm6, %v2855_v50  ;;  %3829 = vmatmul.mubr.msk.f32.vlgmr.msra.gmra.mrb[42].mxu1 %vm835_vm6, %v2855_v50 }
0x1191   :  { %4061 = vmatpush3.bf16.msra.mxu1 %v4579_v63  ;;  %3846 = vmatprep.mubr.msk.f32.mxu1 %vm4177_vm1, %v4178_v6 }
0x1192   :  { %4062 = vmatprep.subr.bf16.mxu1 %v4176_v3 }
0x1195   :  { %4065 = vmatpush3.bf16.msk.msra.mxu1 %vm4244_vm3, %v4585_v1 }
0x1263   :  { %v2927_v51 = vpop.f32.mrb[42].mxu1 }
0x1264   :  { %v3830_v56 = vpop.f32.mrb[43].mxu1  ;;  %3836 = vmatmul.mubr.msk.f32.vlgmr.msra.gmra.mrb[30].mxu0 %vm757_vm5, %v2927_v51 }
0x1265   :  { %4068 = vmatpush3.bf16.msra.mxu0 %v4601_v13  ;;  %3877 = vmatprep.mubr.msk.f32.mxu0 %vm4177_vm1, %v4178_v6  ;;  %v1644_v13 = vadd.f32 %v4775_v52, %v4669_v43 }
0x1266   :  { %4069 = vmatprep.subr.bf16.mxu0 %v4176_v3 }
0x1269   :  { %4071 = vmatpush3.bf16.msra.mxu0 %v4607_v16 }
0x126a   :  { %4072 = vmatprep.subr.bf16.mxu0 %v4176_v3 }
0x126d   :  { %4074 = vmatpush3.bf16.msra.mxu0 %v4617_v20  ;;  %v1647_v20 = vsel %vm95_vm4, %v1644_v13, 0.0 }
0x126e   :  { %4075 = vmatprep.subr.bf16.mxu0 %v4176_v3 }
0x1271   :  { %4077 = vmatpush3.bf16.msra.mxu0 %v4627_v23 }
0x1272   :  { %4078 = vmatprep.subr.bf16.mxu0 %v4176_v3 }
0x1275   :  { %4080 = vmatpush3.bf16.msra.mxu0 %v4637_v28 }
0x1276   :  { %4081 = vmatprep.subr.bf16.mxu0 %v4176_v3 }
0x1279   :  { %4083 = vmatpush3.bf16.msra.mxu0 %v4647_v31 }
0x127a   :  { %4084 = vmatprep.subr.bf16.mxu0 %v4176_v3 }
0x127d   :  { %4087 = vmatpush3.bf16.msk.msra.mxu0 %vm4661_vm10, %v4657_v37 }
0x1337   :  { %v3000_v6 = vpop.f32.mrb[30].mxu0 }
0x1338   :  { %v3004_v8 = vadd.f32 %v3000_v6, %v2765_v27  ;;  %v3837_v63 = vpop.f32.mrb[31].mxu0 }
0x133a   :  { %v3005_v1 = vadd.f32 %v4683_v44, %v3004_v8 }
0x133c   :  { %v3006_v16 = vsel %vm95_vm4, %v3005_v1, 0.0 }
0x133d   :  { %3007 = vadd.xlane.f32.xlu0 %v3006_v16 }
0x1341   :  { %1648 = vadd.xlane.f32.xlu0 %v1647_v20 }
0x13ca   :  { %v3008_v23 = vpop.xlane.xlu0 %3007 }
0x13cb   :  { %v3009_v3 = vmul.f32 0.037037037, %v3008_v23 }
0x13cd   :  { %v3010_v28 = vsub.f32 %v3005_v1, %v3009_v3 }
0x13ce   :  { %v1649_v31 = vpop.xlane.xlu0 %1648 }
0x13cf   :  { %v1650_v38 = vmul.f32 0.037037037, %v1649_v31  ;;  %v3011_v37 = vmul.f32 %v3010_v28, %v3010_v28 }
0x13d1   :  { %v1651_v57 = vsub.f32 %v1644_v13, %v1650_v38  ;;  %v3012_v59 = vsel %vm95_vm4, %v3011_v37, 0.0 }
0x13d2   :  { %3013 = vadd.xlane.f32.xlu1 %v3012_v59 }
0x13d3   :  { %v1652_v44 = vmul.f32 %v1651_v57, %v1651_v57 }
0x13d5   :  { %v1653_v60 = vsel %vm95_vm4, %v1652_v44, 0.0 }
0x13d6   :  { %1654 = vadd.xlane.f32.xlu0 %v1653_v60 }
0x145f   :  { %v3014_v43 = vpop.xlane.xlu1 %3013 }
0x1460   :  { %v3015_v52 = vmul.f32 0.037037037, %v3014_v43 }
0x1462   :  { %v3016_v11 = vadd.f32 1e-05, %v3015_v52 }
0x1463   :  { %v1655_v0 = vpop.xlane.xlu0 %1654 }
0x1464   :  { %4122 = vrsqrt.f32 %v3016_v11  ;;  %v1656_v53 = vmul.f32 0.037037037, %v1655_v0 }
0x1466   :  { %v1657_v5 = vadd.f32 1e-05, %v1656_v53 }
0x1468   :  { %4124 = vrsqrt.f32 %v1657_v5 }
0x146e   :  { %v4123_v9 = vpop.eup %4122 }
0x146f   :  { %v3018_v10 = vmul.f32 %v4123_v9, %v3010_v28 }
0x1471   :  { %3847 = vmatmul.mubr.msk.f32.vlgmr.msra.gmra.mrb[44].mxu1 %vm95_vm4, %v3018_v10 }
0x1472   :  { %v4125_v14 = vpop.eup %4124 }
0x1473   :  { %v1659_v17 = vmul.f32 %v4125_v14, %v1651_v57 }
0x1475   :  { %1660 = vst.msk [vmem:[#allocation2] sm:$0xff] %vm95_vm4, %v1659_v17 }
0x1544   :  { %v3088_v19 = vpop.f32.mrb[44].mxu1 }
0x1545   :  { %v3092_v22 = vmax.f32 %v3088_v19, 0.0  ;;  %v3848_v40 = vpop.f32.mrb[45].mxu1 }
0x1547   :  { %3878 = vmatmul.mubr.msk.f32.vlgmr.msra.gmra.mrb[32].mxu0 %vm1569_vm11, %v3092_v22 }
0x161a   :  { %v3162_v25 = vpop.f32.mrb[32].mxu0 }
0x161b   :  { %v3163_v26 = vadd.f32 %v3162_v25, %v3018_v10  ;;  %v3879_v29 = vpop.f32.mrb[33].mxu0 }
0x161d   :  { %v3166_v2 = vsel %vm95_vm4, %v3163_v26, 0.0 }
0x161e   :  { %3167 = vadd.xlane.f32.xlu1 %v3166_v2 }
0x16ab   :  { %v3168_v34 = vpop.xlane.xlu1 %3167 }
0x16ac   :  { %v3169_v35 = vmul.f32 0.037037037, %v3168_v34 }
0x16ae   :  { %v3170_v39 = vsub.f32 %v3163_v26, %v3169_v35 }
0x16b0   :  { %v3171_v36 = vmul.f32 %v3170_v39, %v3170_v39 }
0x16b2   :  { %v3172_v41 = vsel %vm95_vm4, %v3171_v36, 0.0 }
0x16b3   :  { %3173 = vadd.xlane.f32.xlu1 %v3172_v41 }
0x16b4   :  { %4139 = shalt.err (!%p4136_p4)
}
0x16b5   :  { %s4140_s22 = scalar_lea.hbm %s4901_s6, 768 }
0x16b6   :  { %p4141_p5 = scmp.ne.s32.totalorder %s4901_s6, %s4140_s22  ;;  %p4144_p6 = scmp.lt.u32.totalorder %s4140_s22, %s4901_s6 }
0x16b8   :  { %p4146_p7 = pnand %p4144_p6, %p4141_p5 }
0x16ba   :  { %4149 = shalt.err (!%p4146_p7)
}
0x16bb   :  { %s4181_s1 = smov 128   ;;  %s4182_s27 = smov 8  }
0x16bc   :  { %3204 = dma.vmem_to_hbm [thread:$0]  %s3199_s19, 768, %s4901_s6, [#allocation5], %s4181_s1, %s4181_s1, %s4182_s27  }
0x16bd   :  { %s4183_s30 = smov [#allocation2]  }
0x16be   :  { %s3186_s7 = sshll.u32 %s4183_s30, 4  ;;  %s3187_s7 = int_to_ptr.vmem [resolvable:$true] %s3186_s7 }
0x16bf   :  { %s4150_s8 = scalar_lea.vmem %s3187_s7, 256  ;;  %p4155_p9 = scmp.lt.s32.totalorder %s3187_s7, %s3187_s7 }
0x16c0   :  { %p4151_p8 = scmp.ne.s32.totalorder %s3187_s7, %s4150_s8  ;;  %p4156_p10 = scmp.lt.s32.totalorder %s4150_s8, %s4150_s8 }
0x16c2   :  { %p4157_p11 = por %p4156_p10, %p4155_p9 }
0x16c4   :  { %p4158_p12 = pnand %p4157_p11, %p4151_p8 }
0x1740   :  { %v3174_v42 = vpop.xlane.xlu1 %3173 }
0x1741   :  { %v3175_v4 = vmul.f32 0.037037037, %v3174_v42 }
0x1743   :  { %v3176_v7 = vadd.f32 1e-05, %v3175_v4 }
0x1745   :  { %4126 = vrsqrt.f32 %v3176_v7 }
0x174f   :  { %v4127_v12 = vpop.eup %4126 }
0x1750   :  { %v3178_v15 = vmul.f32 %v4127_v12, %v3170_v39 }
0x1752   :  { %3180 = vst.msk [vmem:[#allocation2 + $0x8] sm:$0xff] %vm95_vm4, %v3178_v15 }
0x1753   :  { %4161 = shalt.err (!%p4158_p12)
}
0x1754   :  { %s4162_s2 = scalar_lea.hbm %s4900_s5, 256 }
0x1755   :  { %p4163_p13 = scmp.ne.s32.totalorder %s4900_s5, %s4162_s2  ;;  %p4166_p0 = scmp.lt.u32.totalorder %s4162_s2, %s4900_s5 }
0x1757   :  { %p4168_p1 = pnand %p4166_p0, %p4163_p13 }
0x1759   :  { %4171 = shalt.err (!%p4168_p1)
}
0x175a   :  { %3192 = dma.vmem_to_hbm [thread:$0]  %s3187_s7, 256, %s4900_s5, [#allocation3], %s4181_s1, %s4181_s1, %s4182_s27  }
0x175b   :  { %4172 = dma.done.wait [#allocation3], 256  }
0x175c   :  { %4173 = vsyncadd [#allocation3], 4294967040 }
0x175d   :  { %4174 = dma.done.wait [#allocation5], 768  }
0x175e   :  { %4175 = vsyncadd [#allocation5], 4294966528 }
0x175f   :  { %3211 = vsyncpa [#allocation3], 1 }
0x1760   :  { %3212 = vsyncpa [#allocation5], 1 }

</bundles_post_ra>
